<compile_context>
chip_gen: v5e
topology: v5e:2x2
jax: 0.10.0
libtpu: 0.0.40
codegen_flags: <defaults>
</compile_context>

<pallas_src>
import jax
import jax.numpy as jnp
from jax.experimental import pallas as pl
from jax.experimental.pallas import tpu as pltpu


def _round_up(x, m):
    return ((x + m - 1) // m) * m


# ---------------------------------------------------------------------------
# Pallas kernel: fused encoder + dynamics MLP (one batch tile per grid step)
# ---------------------------------------------------------------------------
def _world_model_kernel(
    obs_ref,    # (TB, D_obs)   f32
    act_ref,    # (TB, A)       f32
    w1_ref,     # (D_obs, H)    bf16
    b1_ref,     # (1, H)        f32
    w2_ref,     # (H, L)        bf16
    b2_ref,     # (1, L)        f32
    w3z_ref,    # (L, H)        bf16  (dynamics weight, latent part)
    w3a_ref,    # (A, H)        bf16  (dynamics weight, action part)
    b3_ref,     # (1, H)        f32
    w4_ref,     # (H, L)        bf16
    b4_ref,     # (1, L)        f32
    out_ref,    # (TB, L)       f32   next-latent prediction
):
    f32 = jnp.float32
    bf16 = jnp.bfloat16

    def silu(x):  # keep VPU/EUP work in f32 (v5e has no bf16 VPU/EUP datapath)
        return x * jax.nn.sigmoid(x)

    obs = obs_ref[...]
    act = act_ref[...]

    # ---- encoder: obs -> z_obs ----
    h1 = jnp.dot(obs.astype(bf16), w1_ref[...], preferred_element_type=f32) + b1_ref[...]
    h1 = silu(h1)
    z_obs = jnp.dot(h1.astype(bf16), w2_ref[...], preferred_element_type=f32) + b2_ref[...]
    z_obs = silu(z_obs)

    # ---- dynamics: [z_obs, action] -> next latent ----
    # concat([z, a]) @ W3  ==  z @ W3[:L] + a @ W3[L:]   (exact; keeps lane-dense layouts)
    # NOTE: the K=A dot is a tiny MXU pass; it could be folded onto the VPU,
    # but the absolute win is negligible compared to the w1 DMA.
    h2 = (
        jnp.dot(z_obs.astype(bf16), w3z_ref[...], preferred_element_type=f32)
        + jnp.dot(act.astype(bf16), w3a_ref[...], preferred_element_type=f32)
        + b3_ref[...]
    )
    h2 = silu(h2)
    out_ref[...] = (
        jnp.dot(h2.astype(bf16), w4_ref[...], preferred_element_type=f32) + b4_ref[...]
    )


# ---------------------------------------------------------------------------
# Python wrapper
# ---------------------------------------------------------------------------
class WorldModelPallas:
    """JAX/Pallas re-implementation of the (stub) DreamerV3 WorldModel."""

    def __init__(self, obs_shape, action_size, latent_size=128, hidden_size=256):
        self.obs_shape = tuple(obs_shape)            # (C, H, W)
        self.obs_dim = 1
        for d in obs_shape:
            self.obs_dim *= int(d)
        self.action_size = int(action_size)
        self.latent_size = int(latent_size)
        self.hidden_size = int(hidden_size)

        # Deterministic parameter initialization (synthetic, not a checkpoint).
        def init(key, shape, fan_in):
            return (jax.random.normal(key, shape, jnp.float32) / jnp.sqrt(fan_in)
                    ).astype(jnp.bfloat16)

        keys = jax.random.split(jax.random.PRNGKey(42), 6)
        D, H, L, A = self.obs_dim, self.hidden_size, self.latent_size, self.action_size
        self.w1 = init(keys[0], (D, H), D)
        self.b1 = jnp.zeros((1, H), jnp.float32)
        self.w2 = init(keys[1], (H, L), H)
        self.b2 = jnp.zeros((1, L), jnp.float32)
        self.w3z = init(keys[2], (L, H), L + A)
        self.w3a = init(keys[3], (A, H), L + A)
        self.b3 = jnp.zeros((1, H), jnp.float32)
        self.w4 = init(keys[4], (H, L), H)
        self.b4 = jnp.zeros((1, L), jnp.float32)

    def forward(self, obs, action):
        """観測と行動から次状態の潜在表現を予測 (predict next latent)."""
        D, H, L, A = self.obs_dim, self.hidden_size, self.latent_size, self.action_size
        B = obs.shape[0]
        obs_flat = jnp.asarray(obs).reshape(B, D).astype(jnp.float32)
        act = jnp.asarray(action).reshape(B, A).astype(jnp.float32)

        # Batch tile: multiple of 8 sublanes, capped at 256 rows (one full MXU
        # pass on v6e/v7x; two 128-row passes on v5e).
        TB = min(256, _round_up(B, 8))
        B_pad = _round_up(B, TB)
        if B_pad != B:
            obs_flat = jnp.pad(obs_flat, ((0, B_pad - B), (0, 0)))
            act = jnp.pad(act, ((0, B_pad - B), (0, 0)))

        grid = (B_pad // TB,)

        flops = 2 * B_pad * (D * H + H * L + L * H + A * H + H * L)
        transcendentals = B_pad * (H + L + H)                      # sigmoids
        bytes_accessed = (
            (B_pad * D + B_pad * A + B_pad * L) * 4                # obs/act/out f32
            + (D * H + H * L + L * H + A * H + H * L) * 2          # bf16 weights
            + (2 * H + 2 * L) * 4                                  # f32 biases
        )

        batch_map = lambda i: (i, 0)     # obs / act / out tiles walk the batch
        const_map = lambda i: (0, 0)     # weights / biases stay VMEM-resident

        out = pl.pallas_call(
            _world_model_kernel,
            out_shape=jax.ShapeDtypeStruct((B_pad, L), jnp.float32),
            grid=grid,
            in_specs=[
                pl.BlockSpec((TB, D), batch_map),   # obs
                pl.BlockSpec((TB, A), batch_map),   # action
                pl.BlockSpec((D, H), const_map),    # w1
                pl.BlockSpec((1, H), const_map),    # b1
                pl.BlockSpec((H, L), const_map),    # w2
                pl.BlockSpec((1, L), const_map),    # b2
                pl.BlockSpec((L, H), const_map),    # w3z
                pl.BlockSpec((A, H), const_map),    # w3a
                pl.BlockSpec((1, H), const_map),    # b3
                pl.BlockSpec((H, L), const_map),    # w4
                pl.BlockSpec((1, L), const_map),    # b4
            ],
            out_specs=pl.BlockSpec((TB, L), batch_map),
            compiler_params=pltpu.CompilerParams(
                dimension_semantics=("parallel",),
                vmem_limit_bytes=16 << 20,
            ),
            cost_estimate=pl.CostEstimate(
                flops=flops,
                transcendentals=transcendentals,
                bytes_accessed=bytes_accessed,
            ),
        )(
            obs_flat, act,
            self.w1, self.b1, self.w2, self.b2,
            self.w3z, self.w3a, self.b3, self.w4, self.b4,
        )
        return out[:B] if B_pad != B else out

    # TODO(synk): imagine() latent-rollout not implemented — the PyTorch
    # reference is a stub and provides no policy interface; when added, the
    # horizon loop should run inside one kernel (weights resident in VMEM)
    # rather than re-launching this pallas_call per step.


# ---------------------------------------------------------------------------
# Pure-JAX reference (mirrors the kernel's bf16-weight / f32-accumulate math)
# ---------------------------------------------------------------------------
def _reference_forward(m, obs, action):
    f32, bf16 = jnp.float32, jnp.bfloat16
    silu = lambda x: x * jax.nn.sigmoid(x)
    B = obs.shape[0]
    x = obs.reshape(B, m.obs_dim).astype(f32)
    a = action.reshape(B, m.action_size).astype(f32)
    h1 = silu(jnp.dot(x.astype(bf16), m.w1, preferred_element_type=f32) + m.b1)
    z = silu(jnp.dot(h1.astype(bf16), m.w2, preferred_element_type=f32) + m.b2)
    h2 = silu(
        jnp.dot(z.astype(bf16), m.w3z, preferred_element_type=f32)
        + jnp.dot(a.astype(bf16), m.w3a, preferred_element_type=f32)
        + m.b3
    )
    return jnp.dot(h2.astype(bf16), m.w4, preferred_element_type=f32) + m.b4


if __name__ == "__main__":
    # Small shapes consistent with the module: obs NCHW (2, 4, 16, 16), action (2, 4).
    key = jax.random.PRNGKey(0)
    k_obs, k_act = jax.random.split(key)
    obs = jax.random.normal(k_obs, (2, 4, 16, 16), jnp.float32)
    action = jax.random.normal(k_act, (2, 4), jnp.float32)

    model = WorldModelPallas(obs_shape=(4, 16, 16), action_size=4, latent_size=128)

    next_latent = model.forward(obs, action)
    jax.block_until_ready(next_latent)

    ref = _reference_forward(model, obs, action)
    assert next_latent.shape == (2, 128), next_latent.shape
    assert jnp.allclose(next_latent, ref, atol=1e-2, rtol=1e-2), (
        float(jnp.max(jnp.abs(next_latent - ref)))
    )
    print("KERNEL_OK")
</pallas_src>

<mosaic_0001>
module attributes {stable_mosaic.version = 11 : i64} {
  func.func @_world_model_kernel(%arg0: i32, %arg1: memref<8x1024xf32, #tpu.memory_space<vmem>>, %arg2: memref<8x4xf32, #tpu.memory_space<vmem>>, %arg3: memref<1024x256xbf16, #tpu.memory_space<vmem>>, %arg4: memref<1x256xf32, #tpu.memory_space<vmem>>, %arg5: memref<256x128xbf16, #tpu.memory_space<vmem>>, %arg6: memref<1x128xf32, #tpu.memory_space<vmem>>, %arg7: memref<128x256xbf16, #tpu.memory_space<vmem>>, %arg8: memref<4x256xbf16, #tpu.memory_space<vmem>>, %arg9: memref<1x256xf32, #tpu.memory_space<vmem>>, %arg10: memref<256x128xbf16, #tpu.memory_space<vmem>>, %arg11: memref<1x128xf32, #tpu.memory_space<vmem>>, %arg12: memref<8x128xf32, #tpu.memory_space<vmem>>) attributes {dimension_semantics = [#tpu.dimension_semantics<parallel>], iteration_bounds = array<i64: 1>, scalar_prefetch = 0 : i64, scratch_operands = 0 : i64, tpu.core_type = #tpu.core_type<tc>, window_params = [{transform_indices = @transform_0, window_bounds = array<i64: 8, 1024>}, {transform_indices = @transform_1, window_bounds = array<i64: 8, 4>}, {pipeline_mode = #tpu.pipeline_mode<synchronous>, transform_indices = @transform_2, window_bounds = array<i64: 1024, 256>}, {pipeline_mode = #tpu.pipeline_mode<synchronous>, transform_indices = @transform_3, window_bounds = array<i64: 1, 256>}, {pipeline_mode = #tpu.pipeline_mode<synchronous>, transform_indices = @transform_4, window_bounds = array<i64: 256, 128>}, {pipeline_mode = #tpu.pipeline_mode<synchronous>, transform_indices = @transform_5, window_bounds = array<i64: 1, 128>}, {pipeline_mode = #tpu.pipeline_mode<synchronous>, transform_indices = @transform_6, window_bounds = array<i64: 128, 256>}, {pipeline_mode = #tpu.pipeline_mode<synchronous>, transform_indices = @transform_7, window_bounds = array<i64: 4, 256>}, {pipeline_mode = #tpu.pipeline_mode<synchronous>, transform_indices = @transform_8, window_bounds = array<i64: 1, 256>}, {pipeline_mode = #tpu.pipeline_mode<synchronous>, transform_indices = @transform_9, window_bounds = array<i64: 256, 128>}, {pipeline_mode = #tpu.pipeline_mode<synchronous>, transform_indices = @transform_10, window_bounds = array<i64: 1, 128>}, {transform_indices = @transform_11, window_bounds = array<i64: 8, 128>}]} {
    %c0 = arith.constant 0 : index
    %c0_0 = arith.constant 0 : index
    %0 = vector.load %arg1[%c0, %c0_0] : memref<8x1024xf32, #tpu.memory_space<vmem>>, vector<8x1024xf32>
    %c0_1 = arith.constant 0 : index
    %c0_2 = arith.constant 0 : index
    %1 = vector.load %arg2[%c0_1, %c0_2] : memref<8x4xf32, #tpu.memory_space<vmem>>, vector<8x4xf32>
    %2 = arith.truncf %0 : vector<8x1024xf32> to vector<8x1024xbf16>
    %c0_3 = arith.constant 0 : index
    %c0_4 = arith.constant 0 : index
    %3 = vector.load %arg3[%c0_3, %c0_4] : memref<1024x256xbf16, #tpu.memory_space<vmem>>, vector<1024x256xbf16>
    %cst = arith.constant dense<0.000000e+00> : vector<8x256xf32>
    %4 = tpu.matmul %2, %3, %cst {dimension_numbers = #tpu.dot_dimension_numbers<[1], [0], [0], [1], [0, 0, 1, 1], [], []>} : vector<8x1024xbf16>, vector<1024x256xbf16>, vector<8x256xf32> -> vector<8x256xf32>
    %c0_5 = arith.constant 0 : index
    %c0_6 = arith.constant 0 : index
    %5 = vector.load %arg4[%c0_5, %c0_6] : memref<1x256xf32, #tpu.memory_space<vmem>>, vector<1x256xf32>
    %6 = vector.broadcast %5 : vector<1x256xf32> to vector<8x256xf32>
    %7 = arith.addf %4, %6 : vector<8x256xf32>
    %8 = arith.negf %7 : vector<8x256xf32>
    %9 = math.exp %8 : vector<8x256xf32>
    %cst_7 = arith.constant 1.000000e+00 : f32
    %10 = vector.broadcast %cst_7 : f32 to vector<8x256xf32>
    %11 = arith.addf %10, %9 : vector<8x256xf32>
    %12 = arith.divf %10, %11 : vector<8x256xf32>
    %13 = arith.mulf %7, %12 : vector<8x256xf32>
    %14 = arith.truncf %13 : vector<8x256xf32> to vector<8x256xbf16>
    %c0_8 = arith.constant 0 : index
    %c0_9 = arith.constant 0 : index
    %15 = vector.load %arg5[%c0_8, %c0_9] : memref<256x128xbf16, #tpu.memory_space<vmem>>, vector<256x128xbf16>
    %cst_10 = arith.constant dense<0.000000e+00> : vector<8x128xf32>
    %16 = tpu.matmul %14, %15, %cst_10 {dimension_numbers = #tpu.dot_dimension_numbers<[1], [0], [0], [1], [0, 0, 1, 1], [], []>} : vector<8x256xbf16>, vector<256x128xbf16>, vector<8x128xf32> -> vector<8x128xf32>
    %c0_11 = arith.constant 0 : index
    %c0_12 = arith.constant 0 : index
    %17 = vector.load %arg6[%c0_11, %c0_12] : memref<1x128xf32, #tpu.memory_space<vmem>>, vector<1x128xf32>
    %18 = vector.broadcast %17 : vector<1x128xf32> to vector<8x128xf32>
    %19 = arith.addf %16, %18 : vector<8x128xf32>
    %20 = arith.negf %19 : vector<8x128xf32>
    %21 = math.exp %20 : vector<8x128xf32>
    %cst_13 = arith.constant 1.000000e+00 : f32
    %22 = vector.broadcast %cst_13 : f32 to vector<8x128xf32>
    %23 = arith.addf %22, %21 : vector<8x128xf32>
    %24 = arith.divf %22, %23 : vector<8x128xf32>
    %25 = arith.mulf %19, %24 : vector<8x128xf32>
    %26 = arith.truncf %25 : vector<8x128xf32> to vector<8x128xbf16>
    %c0_14 = arith.constant 0 : index
    %c0_15 = arith.constant 0 : index
    %27 = vector.load %arg7[%c0_14, %c0_15] : memref<128x256xbf16, #tpu.memory_space<vmem>>, vector<128x256xbf16>
    %cst_16 = arith.constant dense<0.000000e+00> : vector<8x256xf32>
    %28 = tpu.matmul %26, %27, %cst_16 {dimension_numbers = #tpu.dot_dimension_numbers<[1], [0], [0], [1], [0, 0, 1, 1], [], []>} : vector<8x128xbf16>, vector<128x256xbf16>, vector<8x256xf32> -> vector<8x256xf32>
    %29 = arith.truncf %1 : vector<8x4xf32> to vector<8x4xbf16>
    %c0_17 = arith.constant 0 : index
    %c0_18 = arith.constant 0 : index
    %30 = vector.load %arg8[%c0_17, %c0_18] : memref<4x256xbf16, #tpu.memory_space<vmem>>, vector<4x256xbf16>
    %cst_19 = arith.constant dense<0.000000e+00> : vector<8x256xf32>
    %31 = tpu.matmul %29, %30, %cst_19 {dimension_numbers = #tpu.dot_dimension_numbers<[1], [0], [0], [1], [0, 0, 1, 1], [], []>} : vector<8x4xbf16>, vector<4x256xbf16>, vector<8x256xf32> -> vector<8x256xf32>
    %32 = arith.addf %28, %31 : vector<8x256xf32>
    %c0_20 = arith.constant 0 : index
    %c0_21 = arith.constant 0 : index
    %33 = vector.load %arg9[%c0_20, %c0_21] : memref<1x256xf32, #tpu.memory_space<vmem>>, vector<1x256xf32>
    %34 = vector.broadcast %33 : vector<1x256xf32> to vector<8x256xf32>
    %35 = arith.addf %32, %34 : vector<8x256xf32>
    %36 = arith.negf %35 : vector<8x256xf32>
    %37 = math.exp %36 : vector<8x256xf32>
    %cst_22 = arith.constant 1.000000e+00 : f32
    %38 = vector.broadcast %cst_22 : f32 to vector<8x256xf32>
    %39 = arith.addf %38, %37 : vector<8x256xf32>
    %40 = arith.divf %38, %39 : vector<8x256xf32>
    %41 = arith.mulf %35, %40 : vector<8x256xf32>
    %42 = arith.truncf %41 : vector<8x256xf32> to vector<8x256xbf16>
    %c0_23 = arith.constant 0 : index
    %c0_24 = arith.constant 0 : index
    %43 = vector.load %arg10[%c0_23, %c0_24] : memref<256x128xbf16, #tpu.memory_space<vmem>>, vector<256x128xbf16>
    %cst_25 = arith.constant dense<0.000000e+00> : vector<8x128xf32>
    %44 = tpu.matmul %42, %43, %cst_25 {dimension_numbers = #tpu.dot_dimension_numbers<[1], [0], [0], [1], [0, 0, 1, 1], [], []>} : vector<8x256xbf16>, vector<256x128xbf16>, vector<8x128xf32> -> vector<8x128xf32>
    %c0_26 = arith.constant 0 : index
    %c0_27 = arith.constant 0 : index
    %45 = vector.load %arg11[%c0_26, %c0_27] : memref<1x128xf32, #tpu.memory_space<vmem>>, vector<1x128xf32>
    %46 = vector.broadcast %45 : vector<1x128xf32> to vector<8x128xf32>
    %47 = arith.addf %44, %46 : vector<8x128xf32>
    %c0_28 = arith.constant 0 : index
    %c0_29 = arith.constant 0 : index
    %48 = vector.load %arg12[%c0_28, %c0_29] : memref<8x128xf32, #tpu.memory_space<vmem>>, vector<8x128xf32>
    tpu.vector_store %arg12[%c0_28, %c0_29], %47 {strides = array<i32>} : memref<8x128xf32, #tpu.memory_space<vmem>>, vector<8x128xf32>,
    return
  }
  func.func @transform_0(%arg0: i32) -> (i32, i32) {
    %c0_i32 = arith.constant 0 : i32
    %c0_i32_0 = arith.constant 0 : i32
    return %arg0, %c0_i32 : i32, i32
  }
  func.func @transform_1(%arg0: i32) -> (i32, i32) {
    %c0_i32 = arith.constant 0 : i32
    %c0_i32_0 = arith.constant 0 : i32
    return %arg0, %c0_i32 : i32, i32
  }
  func.func @transform_2(%arg0: i32) -> (i32, i32) {
    %c0_i32 = arith.constant 0 : i32
    %c0_i32_0 = arith.constant 0 : i32
    %c0_i32_1 = arith.constant 0 : i32
    return %c0_i32, %c0_i32_0 : i32, i32
  }
  func.func @transform_3(%arg0: i32) -> (i32, i32) {
    %c0_i32 = arith.constant 0 : i32
    %c0_i32_0 = arith.constant 0 : i32
    %c0_i32_1 = arith.constant 0 : i32
    return %c0_i32, %c0_i32_0 : i32, i32
  }
  func.func @transform_4(%arg0: i32) -> (i32, i32) {
    %c0_i32 = arith.constant 0 : i32
    %c0_i32_0 = arith.constant 0 : i32
    %c0_i32_1 = arith.constant 0 : i32
    return %c0_i32, %c0_i32_0 : i32, i32
  }
  func.func @transform_5(%arg0: i32) -> (i32, i32) {
    %c0_i32 = arith.constant 0 : i32
    %c0_i32_0 = arith.constant 0 : i32
    %c0_i32_1 = arith.constant 0 : i32
    return %c0_i32, %c0_i32_0 : i32, i32
  }
  func.func @transform_6(%arg0: i32) -> (i32, i32) {
    %c0_i32 = arith.constant 0 : i32
    %c0_i32_0 = arith.constant 0 : i32
    %c0_i32_1 = arith.constant 0 : i32
    return %c0_i32, %c0_i32_0 : i32, i32
  }
  func.func @transform_7(%arg0: i32) -> (i32, i32) {
    %c0_i32 = arith.constant 0 : i32
    %c0_i32_0 = arith.constant 0 : i32
    %c0_i32_1 = arith.constant 0 : i32
    return %c0_i32, %c0_i32_0 : i32, i32
  }
  func.func @transform_8(%arg0: i32) -> (i32, i32) {
    %c0_i32 = arith.constant 0 : i32
    %c0_i32_0 = arith.constant 0 : i32
    %c0_i32_1 = arith.constant 0 : i32
    return %c0_i32, %c0_i32_0 : i32, i32
  }
  func.func @transform_9(%arg0: i32) -> (i32, i32) {
    %c0_i32 = arith.constant 0 : i32
    %c0_i32_0 = arith.constant 0 : i32
    %c0_i32_1 = arith.constant 0 : i32
    return %c0_i32, %c0_i32_0 : i32, i32
  }
  func.func @transform_10(%arg0: i32) -> (i32, i32) {
    %c0_i32 = arith.constant 0 : i32
    %c0_i32_0 = arith.constant 0 : i32
    %c0_i32_1 = arith.constant 0 : i32
    return %c0_i32, %c0_i32_0 : i32, i32
  }
  func.func @transform_11(%arg0: i32) -> (i32, i32) {
    %c0_i32 = arith.constant 0 : i32
    %c0_i32_0 = arith.constant 0 : i32
    return %arg0, %c0_i32 : i32, i32
  }
}

</mosaic_0001>

<bundles_post_ra>
// kernel: tpu_custom_call.1
= control target key start
LH: loop header
LB: loop body
LE: loop exit
PB: predicated region body
PF: predicated region fallthrough
CT: control target
= control target key end

     0   :  { %16 = vsyncpa [#allocation3], 0  ;;  %s2943_s0 = inlined_call_operand.hbm [shape: f32[8,1024], index: 0, kind: input, shape index: {}]   ;;  %s2944_s1 = inlined_call_operand.vmem [shape: f32[8,4], index: 1, kind: input, shape index: {}]   ;;  %s2945_s2 = inlined_call_operand.hbm [shape: bf16[1024,256], index: 2, kind: input, shape index: {}]   ;;  %s2946_s3 = inlined_call_operand.vmem [shape: f32[1,256], index: 3, kind: input, shape index: {}]   ;;  %s2947_s4 = inlined_call_operand.hbm [shape: bf16[256,128], index: 4, kind: input, shape index: {}]   ;;  %s2948_s5 = inlined_call_operand.vmem [shape: f32[1,128], index: 5, kind: input, shape index: {}]   ;;  %s2949_s6 = inlined_call_operand.hbm [shape: bf16[128,256], index: 6, kind: input, shape index: {}]   ;;  %s2950_s7 = inlined_call_operand.vmem [shape: bf16[4,256], index: 7, kind: input, shape index: {}]   ;;  %s2951_s8 = inlined_call_operand.vmem [shape: f32[1,256], index: 8, kind: input, shape index: {}]   ;;  %s2952_s9 = inlined_call_operand.hbm [shape: bf16[256,128], index: 9, kind: input, shape index: {}]   ;;  %s2953_s10 = inlined_call_operand.vmem [shape: f32[1,128], index: 10, kind: input, shape index: {}]   ;;  %s2954_s11 = inlined_call_operand.hbm [shape: f32[8,128], index: 11, kind: output, shape index: {}]  }
   0x1   :  { %17 = vsyncpa [#allocation6], 0 }
   0x2   :  { %18 = vsyncpa [#allocation9], 0  ;;  %s37_s19 = sshll.u32 %s2945_s2, 4  ;;  %s38_s19 = int_to_ptr.hbm [resolvable:$true] %s37_s19 }
   0x3   :  { %19 = vsyncpa [#allocation4], 0  ;;  %s2798_s20 = smov [#allocation5]   ;;  %s67_s24 = sshll.u32 %s2949_s6, 4  ;;  %s68_s24 = int_to_ptr.hbm [resolvable:$true] %s67_s24 }
   0x4   :  { %s39_s21 = sshll.u32 %s2798_s20, 4  ;;  %s2799_s25 = smov 128   ;;  %s40_s21 = int_to_ptr.vmem [resolvable:$true] %s39_s21 }
   0x5   :  { %s2800_s26 = smov 8   ;;  %s2801_s27 = smov [#allocation8]  }
   0x6   :  { %45 = dma.hbm_to_vmem [thread:$0]  %s38_s19, 16384, %s40_s21, [#allocation6], %s2799_s25, %s2799_s25, %s2800_s26  }
   0x7   :  { %s69_s28 = sshll.u32 %s2801_s27, 4  ;;  %s25_s12 = sshll.u32 %s2943_s0, 4  ;;  %s70_s28 = int_to_ptr.vmem [resolvable:$true] %s69_s28  ;;  %s26_s12 = int_to_ptr.hbm [resolvable:$true] %s25_s12 }
   0x8   :  { %75 = dma.hbm_to_vmem [thread:$0]  %s68_s24, 2048, %s70_s28, [#allocation9], %s2799_s25, %s2799_s25, %s2800_s26  }
   0x9   :  { %s52_s14 = sshll.u32 %s2947_s4, 4  ;;  %s2802_s15 = smov [#allocation2]   ;;  %s53_s14 = int_to_ptr.hbm [resolvable:$true] %s52_s14 }
   0xa   :  { %s27_s16 = sshll.u32 %s2802_s15, 4  ;;  %s2803_s6 = smov [#allocation7]   ;;  %s28_s16 = int_to_ptr.vmem [resolvable:$true] %s27_s16 }
   0xb   :  { %30 = dma.hbm_to_vmem [thread:$0]  %s26_s12, 1024, %s28_s16, [#allocation3]  }
   0xc   :  { %s54_s17 = sshll.u32 %s2803_s6, 4  ;;  %s2804_s18 = smov 64   ;;  %s55_s17 = int_to_ptr.vmem [resolvable:$true] %s54_s17 }
   0xd   :  { %s2805_s19 = smov 4   ;;  %s84_s21 = sshll.u32 %s2952_s9, 4  ;;  %s85_s21 = int_to_ptr.hbm [resolvable:$true] %s84_s21 }
   0xe   :  { %60 = dma.hbm_to_vmem [thread:$0]  %s53_s14, 2048, %s55_s17, [#allocation6], %s2804_s18, %s2804_s18, %s2805_s19  }
   0xf   :  { %s2806_s22 = smov [#allocation10]  }
  0x10   :  { %s86_s23 = sshll.u32 %s2806_s22, 4  ;;  %s87_s23 = int_to_ptr.vmem [resolvable:$true] %s86_s23 }
  0x11   :  { %92 = dma.hbm_to_vmem [thread:$0]  %s85_s21, 2048, %s87_s23, [#allocation9], %s2804_s18, %s2804_s18, %s2805_s19  }
  0x12   :  { %2790 = dma.done.wait [#allocation3], 1024  }
  0x13   :  { %2791 = vsyncadd [#allocation3], 4294966272 }
  0x14   :  { %2792 = dma.done.wait [#allocation6], 18432  }
  0x15   :  { %2793 = vsyncadd [#allocation6], 4294948864 }
  0x16   :  { %2794 = dma.done.wait [#allocation9], 4096  }
  0x17   :  { %2795 = vsyncadd [#allocation9], 4294963200  ;;  %v1785_v0 = vld [vmem:[#allocation5 + $0x70] sm:$0xf]  ;;  %v2453_v1 = vld [vmem:[#allocation5 + $0x74] sm:$0xf0] }
  0x18   :  { %v1849_v2 = vld [vmem:[#allocation5 + $0xf0] sm:$0xf]  ;;  %v1786_v3 = vor.u32 %v2453_v1, %v1785_v0  ;;  %v2469_v4 = vld [vmem:[#allocation5 + $0xf4] sm:$0xf0]  ;;  %v1777_v11 = vld [vmem:[#allocation5 + $0x60] sm:$0xf] }
  0x19   :  { %v1913_v5 = vld [vmem:[#allocation5 + $0x170] sm:$0xf]  ;;  %v2485_v6 = vld [vmem:[#allocation5 + $0x174] sm:$0xf0]  ;;  %v1850_v7 = vor.u32 %v2469_v4, %v1849_v2  ;;  %v2451_v13 = vld [vmem:[#allocation5 + $0x64] sm:$0xf0] }
  0x1a   :  { %v1914_v8 = vor.u32 %v2485_v6, %v1913_v5  ;;  %v1977_v9 = vld [vmem:[#allocation5 + $0x1f0] sm:$0xf]  ;;  %v2501_v10 = vld [vmem:[#allocation5 + $0x1f4] sm:$0xf0]  ;;  %907 = vmatpush.bf16.msra.mxu0 %v1786_v3  ;;  %v1841_v14 = vld [vmem:[#allocation5 + $0xe0] sm:$0xf]  ;;  %v1778_v16 = vor.u32 %v2451_v13, %v1777_v11 }
  0x1b   :  { %v1978_v12 = vor.u32 %v2501_v10, %v1977_v9  ;;  %v2467_v15 = vld [vmem:[#allocation5 + $0xe4] sm:$0xf0]  ;;  %920 = vmatpush.bf16.msra.mxu1 %v1850_v7  ;;  %v1905_v18 = vld [vmem:[#allocation5 + $0x160] sm:$0xf]  ;;  %v1769_v23 = vld [vmem:[#allocation5 + $0x50] sm:$0xf] }
  0x1c   :  { %933 = vmatpush.bf16.msra.mxu2 %v1914_v8  ;;  %v1842_v17 = vor.u32 %v2467_v15, %v1841_v14  ;;  %v2483_v19 = vld [vmem:[#allocation5 + $0x164] sm:$0xf0]  ;;  %v1969_v20 = vld [vmem:[#allocation5 + $0x1e0] sm:$0xf]  ;;  %v2449_v24 = vld [vmem:[#allocation5 + $0x54] sm:$0xf0] }
  0x1d   :  { %946 = vmatpush.bf16.msra.mxu3 %v1978_v12  ;;  %v1906_v21 = vor.u32 %v2483_v19, %v1905_v18  ;;  %v2499_v22 = vld [vmem:[#allocation5 + $0x1e4] sm:$0xf0]  ;;  %v1833_v26 = vld [vmem:[#allocation5 + $0xd0] sm:$0xf]  ;;  %v2465_v27 = vld [vmem:[#allocation5 + $0xd4] sm:$0xf0]  ;;  %v1770_v29 = vor.u32 %v2449_v24, %v1769_v23 }
  0x1e   :  { %v1970_v25 = vor.u32 %v2499_v22, %v1969_v20  ;;  %v1897_v28 = vld [vmem:[#allocation5 + $0x150] sm:$0xf]  ;;  %908 = vmatpush.bf16.msra.mxu0 %v1778_v16  ;;  %v2481_v30 = vld [vmem:[#allocation5 + $0x154] sm:$0xf0]  ;;  %v1834_v33 = vor.u32 %v2465_v27, %v1833_v26  ;;  %v1761_v35 = vld [vmem:[#allocation5 + $0x40] sm:$0xf] }
  0x1f   :  { %v1961_v31 = vld [vmem:[#allocation5 + $0x1d0] sm:$0xf]  ;;  %v2497_v32 = vld [vmem:[#allocation5 + $0x1d4] sm:$0xf0]  ;;  %921 = vmatpush.bf16.msra.mxu1 %v1842_v17  ;;  %v1898_v34 = vor.u32 %v2481_v30, %v1897_v28  ;;  %v2447_v36 = vld [vmem:[#allocation5 + $0x44] sm:$0xf0] }
  0x20   :  { %934 = vmatpush.bf16.msra.mxu2 %v1906_v21  ;;  %v1825_v37 = vld [vmem:[#allocation5 + $0xc0] sm:$0xf]  ;;  %v1962_v38 = vor.u32 %v2497_v32, %v1961_v31  ;;  %v2463_v39 = vld [vmem:[#allocation5 + $0xc4] sm:$0xf0]  ;;  %v1762_v44 = vor.u32 %v2447_v36, %v1761_v35  ;;  %v1753_v47 = vld [vmem:[#allocation5 + $0x30] sm:$0xf] }
  0x21   :  { %947 = vmatpush.bf16.msra.mxu3 %v1970_v25  ;;  %v1889_v40 = vld [vmem:[#allocation5 + $0x140] sm:$0xf]  ;;  %v2479_v41 = vld [vmem:[#allocation5 + $0x144] sm:$0xf0]  ;;  %v1826_v45 = vor.u32 %v2463_v39, %v1825_v37  ;;  %v2445_v48 = vld [vmem:[#allocation5 + $0x34] sm:$0xf0] }
  0x22   :  { %v1953_v42 = vld [vmem:[#allocation5 + $0x1c0] sm:$0xf]  ;;  %v2495_v43 = vld [vmem:[#allocation5 + $0x1c4] sm:$0xf0]  ;;  %909 = vmatpush.bf16.msra.mxu0 %v1770_v29  ;;  %v1890_v46 = vor.u32 %v2479_v41, %v1889_v40  ;;  %v1817_v49 = vld [vmem:[#allocation5 + $0xb0] sm:$0xf]  ;;  %v1754_v56 = vor.u32 %v2445_v48, %v1753_v47 }
  0x23   :  { %922 = vmatpush.bf16.msra.mxu1 %v1834_v33  ;;  %v1954_v50 = vor.u32 %v2495_v43, %v1953_v42  ;;  %v2461_v51 = vld [vmem:[#allocation5 + $0xb4] sm:$0xf0]  ;;  %v1881_v52 = vld [vmem:[#allocation5 + $0x130] sm:$0xf]  ;;  %v1745_v59 = vld [vmem:[#allocation5 + $0x20] sm:$0xf] }
  0x24   :  { %935 = vmatpush.bf16.msra.mxu2 %v1898_v34  ;;  %v2477_v53 = vld [vmem:[#allocation5 + $0x134] sm:$0xf0]  ;;  %v1945_v54 = vld [vmem:[#allocation5 + $0x1b0] sm:$0xf]  ;;  %v1818_v57 = vor.u32 %v2461_v51, %v1817_v49  ;;  %v2443_v60 = vld [vmem:[#allocation5 + $0x24] sm:$0xf0] }
  0x25   :  { %948 = vmatpush.bf16.msra.mxu3 %v1962_v38  ;;  %v2493_v55 = vld [vmem:[#allocation5 + $0x1b4] sm:$0xf0]  ;;  %v1882_v58 = vor.u32 %v2477_v53, %v1881_v52  ;;  %v1809_v61 = vld [vmem:[#allocation5 + $0xa0] sm:$0xf]  ;;  %v2459_v63 = vld [vmem:[#allocation5 + $0xa4] sm:$0xf0]  ;;  %v1746_v4 = vor.u32 %v2443_v60, %v1745_v59 }
  0x26   :  { %910 = vmatpush.bf16.msra.mxu0 %v1762_v44  ;;  %v1946_v62 = vor.u32 %v2493_v55, %v1945_v54  ;;  %v1873_v0 = vld [vmem:[#allocation5 + $0x120] sm:$0xf]  ;;  %v2475_v1 = vld [vmem:[#allocation5 + $0x124] sm:$0xf0]  ;;  %v1810_v5 = vor.u32 %v2459_v63, %v1809_v61  ;;  %v1737_v7 = vld [vmem:[#allocation5 + $0x10] sm:$0xf] }
  0x27   :  { %923 = vmatpush.bf16.msra.mxu1 %v1826_v45  ;;  %v1937_v2 = vld [vmem:[#allocation5 + $0x1a0] sm:$0xf]  ;;  %v2491_v3 = vld [vmem:[#allocation5 + $0x1a4] sm:$0xf0]  ;;  %v1874_v6 = vor.u32 %v2475_v1, %v1873_v0  ;;  %v2441_v8 = vld [vmem:[#allocation5 + $0x14] sm:$0xf0] }
  0x28   :  { %936 = vmatpush.bf16.msra.mxu2 %v1890_v46  ;;  %v1801_v9 = vld [vmem:[#allocation5 + $0x90] sm:$0xf]  ;;  %v1938_v10 = vor.u32 %v2491_v3, %v1937_v2  ;;  %v2457_v11 = vld [vmem:[#allocation5 + $0x94] sm:$0xf0]  ;;  %v1738_v16 = vor.u32 %v2441_v8, %v1737_v7  ;;  %v1729_v17 = vld [vmem:[#allocation5] sm:$0xf] }
  0x29   :  { %949 = vmatpush.bf16.msra.mxu3 %v1954_v50  ;;  %v1865_v12 = vld [vmem:[#allocation5 + $0x110] sm:$0xf]  ;;  %v2473_v13 = vld [vmem:[#allocation5 + $0x114] sm:$0xf0]  ;;  %v2439_v18 = vld [vmem:[#allocation5 + $0x4] sm:$0xf0]  ;;  %v1802_v19 = vor.u32 %v2457_v11, %v1801_v9 }
  0x2a   :  { %911 = vmatpush.bf16.msra.mxu0 %v1754_v56  ;;  %v1929_v14 = vld [vmem:[#allocation5 + $0x190] sm:$0xf]  ;;  %v2489_v15 = vld [vmem:[#allocation5 + $0x194] sm:$0xf0]  ;;  %v1866_v20 = vor.u32 %v2473_v13, %v1865_v12  ;;  %v1793_v21 = vld [vmem:[#allocation5 + $0x80] sm:$0xf]  ;;  %v1730_v31 = vor.u32 %v2439_v18, %v1729_v17 }
  0x2b   :  { %924 = vmatpush.bf16.msra.mxu1 %v1818_v57  ;;  %v2455_v22 = vld [vmem:[#allocation5 + $0x84] sm:$0xf0]  ;;  %v1857_v23 = vld [vmem:[#allocation5 + $0x100] sm:$0xf]  ;;  %v1930_v24 = vor.u32 %v2489_v15, %v1929_v14  ;;  %v2041_v28 = vld [vmem:[#allocation5 + $0x270] sm:$0xf] }
  0x2c   :  { %937 = vmatpush.bf16.msra.mxu2 %v1882_v58  ;;  %v2471_v25 = vld [vmem:[#allocation5 + $0x104] sm:$0xf0]  ;;  %v1921_v26 = vld [vmem:[#allocation5 + $0x180] sm:$0xf]  ;;  %v2517_v29 = vld [vmem:[#allocation5 + $0x274] sm:$0xf0]  ;;  %v1794_v35 = vor.u32 %v2455_v22, %v1793_v21 }
  0x2d   :  { %950 = vmatpush.bf16.msra.mxu3 %v1946_v62  ;;  %v2487_v27 = vld [vmem:[#allocation5 + $0x184] sm:$0xf0]  ;;  %v2105_v30 = vld [vmem:[#allocation5 + $0x2f0] sm:$0xf]  ;;  %v2533_v32 = vld [vmem:[#allocation5 + $0x2f4] sm:$0xf0]  ;;  %v1858_v36 = vor.u32 %v2471_v25, %v1857_v23  ;;  %v2042_v40 = vor.u32 %v2517_v29, %v2041_v28 }
  0x2e   :  { %912 = vmatpush.bf16.msra.mxu0 %v1746_v4  ;;  %v2169_v33 = vld [vmem:[#allocation5 + $0x370] sm:$0xf]  ;;  %v2549_v34 = vld [vmem:[#allocation5 + $0x374] sm:$0xf0]  ;;  %v1922_v39 = vor.u32 %v2487_v27, %v1921_v26  ;;  %v2106_v41 = vor.u32 %v2533_v32, %v2105_v30  ;;  %v2033_v43 = vld [vmem:[#allocation5 + $0x260] sm:$0xf] }
  0x2f   :  { %925 = vmatpush.bf16.msra.mxu1 %v1810_v5  ;;  %v2233_v37 = vld [vmem:[#allocation5 + $0x3f0] sm:$0xf]  ;;  %v2565_v38 = vld [vmem:[#allocation5 + $0x3f4] sm:$0xf0]  ;;  %v2170_v42 = vor.u32 %v2549_v34, %v2169_v33  ;;  %v2515_v44 = vld [vmem:[#allocation5 + $0x264] sm:$0xf0] }
  0x30   :  { %938 = vmatpush.bf16.msra.mxu2 %v1874_v6  ;;  %v2097_v45 = vld [vmem:[#allocation5 + $0x2e0] sm:$0xf]  ;;  %v2234_v46 = vor.u32 %v2565_v38, %v2233_v37  ;;  %v2531_v47 = vld [vmem:[#allocation5 + $0x2e4] sm:$0xf0]  ;;  %v118_v52 = vld [vmem:[#allocation2 + $0x10] sm:$0xff]  ;;  %v2034_v53 = vor.u32 %v2515_v44, %v2033_v43  ;;  %vm1362_vm8 = vcmask 1041408  }
  0x31   :  { %951 = vmatpush.bf16.msra.mxu3 %v1938_v10  ;;  %v2161_v48 = vld [vmem:[#allocation5 + $0x360] sm:$0xf]  ;;  %v2547_v49 = vld [vmem:[#allocation5 + $0x364] sm:$0xf0]  ;;  %v2025_v54 = vld [vmem:[#allocation5 + $0x250] sm:$0xf]  ;;  %v2883_v57 = vpack.c.bf16 %v118_v52, %v118_v52  ;;  %v2098_v58 = vor.u32 %v2531_v47, %v2097_v45 }
  0x32   :  { %913 = vmatpush.bf16.msra.mxu0 %v1738_v16  ;;  %v2225_v50 = vld [vmem:[#allocation5 + $0x3e0] sm:$0xf]  ;;  %v2563_v51 = vld [vmem:[#allocation5 + $0x3e4] sm:$0xf0]  ;;  %v2513_v55 = vld [vmem:[#allocation5 + $0x254] sm:$0xf0]  ;;  %v2162_v59 = vor.u32 %v2547_v49, %v2161_v48 }
  0x33   :  { %926 = vmatpush.bf16.msra.mxu1 %v1802_v19  ;;  %v2089_v56 = vld [vmem:[#allocation5 + $0x2d0] sm:$0xf]  ;;  %v2529_v60 = vld [vmem:[#allocation5 + $0x2d4] sm:$0xf0]  ;;  %v2226_v63 = vor.u32 %v2563_v51, %v2225_v50  ;;  %v116_v0 = vld [vmem:[#allocation2] sm:$0xff]  ;;  %v2026_v8 = vor.u32 %v2513_v55, %v2025_v54  ;;  %vm1358_vm9 = vcmask 31744  }
  0x34   :  { %939 = vmatpush.bf16.msra.mxu2 %v1866_v20  ;;  %v2153_v61 = vld [vmem:[#allocation5 + $0x350] sm:$0xf]  ;;  %v2545_v62 = vld [vmem:[#allocation5 + $0x354] sm:$0xf0]  ;;  %v117_v2 = vld [vmem:[#allocation2 + $0x8] sm:$0xff]  ;;  %v2886_v5 = vpack.c.bf16 %v116_v0, %v116_v0  ;;  %v2090_v9 = vor.u32 %v2529_v60, %v2089_v56  ;;  %s2807_s29 = smov [#allocation11]  }
  0x35   :  { %952 = vmatpush.bf16.msra.mxu3 %v1930_v24  ;;  %v119_v1 = vld [vmem:[#allocation2 + $0x18] sm:$0xff]  ;;  %v2217_v3 = vld [vmem:[#allocation5 + $0x3d0] sm:$0xf]  ;;  %v2890_v7 = vpack.c.bf16 %v117_v2, %v117_v2  ;;  %v2154_v10 = vor.u32 %v2545_v62, %v2153_v61  ;;  %v2017_v11 = vld [vmem:[#allocation5 + $0x240] sm:$0xf]  ;;  %s1713_s30 = sshll.u32 %s2807_s29, 4  ;;  %s1714_s30 = int_to_ptr.vmem [resolvable:$true] %s1713_s30 }
  0x36   :  { %914 = vmatpush.bf16.msra.mxu0 %v1730_v31  ;;  %v2561_v4 = vld [vmem:[#allocation5 + $0x3d4] sm:$0xf0]  ;;  %v2888_v6 = vpack.c.bf16 %v119_v1, %v119_v1  ;;  %v2511_v12 = vld [vmem:[#allocation5 + $0x244] sm:$0xf0]  ;;  %v2081_v13 = vld [vmem:[#allocation5 + $0x2c0] sm:$0xf] }
  0x37   :  { %927 = vmatpush.bf16.msra.mxu1 %v1794_v35  ;;  %v2218_v14 = vor.u32 %v2561_v4, %v2217_v3  ;;  %v2527_v15 = vld [vmem:[#allocation5 + $0x2c4] sm:$0xf0]  ;;  %v2145_v16 = vld [vmem:[#allocation5 + $0x340] sm:$0xf]  ;;  %v2018_v20 = vor.u32 %v2511_v12, %v2017_v11  ;;  %v2009_v23 = vld [vmem:[#allocation5 + $0x230] sm:$0xf] }
  0x38   :  { %940 = vmatpush.bf16.msra.mxu2 %v1858_v36  ;;  %v2543_v17 = vld [vmem:[#allocation5 + $0x344] sm:$0xf0]  ;;  %v2209_v18 = vld [vmem:[#allocation5 + $0x3c0] sm:$0xf]  ;;  %v2082_v21 = vor.u32 %v2527_v15, %v2081_v13  ;;  %v2509_v24 = vld [vmem:[#allocation5 + $0x234] sm:$0xf0] }
  0x39   :  { %953 = vmatpush.bf16.msra.mxu3 %v1922_v39  ;;  %915 = vmatmul.bf16.vlgmr.msra.gmra.mxu0 %v2886_v5  ;;  %v2559_v19 = vld [vmem:[#allocation5 + $0x3c4] sm:$0xf0]  ;;  %v2146_v22 = vor.u32 %v2543_v17, %v2145_v16  ;;  %v2073_v25 = vld [vmem:[#allocation5 + $0x2b0] sm:$0xf]  ;;  %v2525_v27 = vld [vmem:[#allocation5 + $0x2b4] sm:$0xf0]  ;;  %v2010_v32 = vor.u32 %v2509_v24, %v2009_v23 }
  0x3a   :  { %959 = vmatpush.bf16.msrb.mxu0 %v2042_v40  ;;  %928 = vmatmul.bf16.vlgmr.msra.gmra.mxu1 %v2890_v7  ;;  %v2210_v26 = vor.u32 %v2559_v19, %v2209_v18  ;;  %v2137_v28 = vld [vmem:[#allocation5 + $0x330] sm:$0xf]  ;;  %v2541_v29 = vld [vmem:[#allocation5 + $0x334] sm:$0xf0]  ;;  %v2074_v33 = vor.u32 %v2525_v27, %v2073_v25  ;;  %v2001_v35 = vld [vmem:[#allocation5 + $0x220] sm:$0xf] }
  0x3b   :  { %972 = vmatpush.bf16.msrb.mxu1 %v2106_v41  ;;  %941 = vmatmul.bf16.vlgmr.msra.gmra.mxu2 %v2883_v57  ;;  %v2201_v30 = vld [vmem:[#allocation5 + $0x3b0] sm:$0xf]  ;;  %v2557_v31 = vld [vmem:[#allocation5 + $0x3b4] sm:$0xf0]  ;;  %v2138_v34 = vor.u32 %v2541_v29, %v2137_v28  ;;  %v2507_v36 = vld [vmem:[#allocation5 + $0x224] sm:$0xf0] }
  0x3c   :  { %985 = vmatpush.bf16.msrb.mxu2 %v2170_v42  ;;  %954 = vmatmul.bf16.vlgmr.msra.gmra.mxu3 %v2888_v6  ;;  %v2065_v37 = vld [vmem:[#allocation5 + $0x2a0] sm:$0xf]  ;;  %v2202_v38 = vor.u32 %v2557_v31, %v2201_v30  ;;  %v2523_v39 = vld [vmem:[#allocation5 + $0x2a4] sm:$0xf0]  ;;  %v2002_v44 = vor.u32 %v2507_v36, %v2001_v35  ;;  %v1993_v47 = vld [vmem:[#allocation5 + $0x210] sm:$0xf] }
  0x3d   :  { %998 = vmatpush.bf16.msrb.mxu3 %v2234_v46  ;;  %v2129_v40 = vld [vmem:[#allocation5 + $0x320] sm:$0xf]  ;;  %v2539_v41 = vld [vmem:[#allocation5 + $0x324] sm:$0xf0]  ;;  %v2066_v45 = vor.u32 %v2523_v39, %v2065_v37  ;;  %v2505_v48 = vld [vmem:[#allocation5 + $0x214] sm:$0xf0] }
  0x3e   :  { %960 = vmatpush.bf16.msrb.mxu0 %v2034_v53  ;;  %v2193_v42 = vld [vmem:[#allocation5 + $0x3a0] sm:$0xf]  ;;  %v2555_v43 = vld [vmem:[#allocation5 + $0x3a4] sm:$0xf0]  ;;  %v2130_v46 = vor.u32 %v2539_v41, %v2129_v40  ;;  %v2057_v49 = vld [vmem:[#allocation5 + $0x290] sm:$0xf]  ;;  %v1994_v56 = vor.u32 %v2505_v48, %v1993_v47 }
  0x3f   :  { %973 = vmatpush.bf16.msrb.mxu1 %v2098_v58  ;;  %v2194_v50 = vor.u32 %v2555_v43, %v2193_v42  ;;  %v2521_v51 = vld [vmem:[#allocation5 + $0x294] sm:$0xf0]  ;;  %v2121_v52 = vld [vmem:[#allocation5 + $0x310] sm:$0xf]  ;;  %v1985_v58 = vld [vmem:[#allocation5 + $0x200] sm:$0xf] }
  0x40   :  { %986 = vmatpush.bf16.msrb.mxu2 %v2162_v59  ;;  %v2537_v53 = vld [vmem:[#allocation5 + $0x314] sm:$0xf0]  ;;  %v2185_v54 = vld [vmem:[#allocation5 + $0x390] sm:$0xf]  ;;  %v2503_v59 = vld [vmem:[#allocation5 + $0x204] sm:$0xf0]  ;;  %v2058_v60 = vor.u32 %v2521_v51, %v2057_v49 }
  0x41   :  { %999 = vmatpush.bf16.msrb.mxu3 %v2226_v63  ;;  %v2553_v55 = vld [vmem:[#allocation5 + $0x394] sm:$0xf0]  ;;  %v2122_v61 = vor.u32 %v2537_v53, %v2121_v52  ;;  %v2049_v62 = vld [vmem:[#allocation5 + $0x280] sm:$0xf]  ;;  %v2519_v63 = vld [vmem:[#allocation5 + $0x284] sm:$0xf0]  ;;  %v1986_v11 = vor.u32 %v2503_v59, %v1985_v58 }
  0x42   :  { %961 = vmatpush.bf16.msrb.mxu0 %v2026_v8  ;;  %v2113_v0 = vld [vmem:[#allocation5 + $0x300] sm:$0xf]  ;;  %v2186_v1 = vor.u32 %v2553_v55, %v2185_v54  ;;  %v2535_v2 = vld [vmem:[#allocation5 + $0x304] sm:$0xf0]  ;;  %v2452_v8 = vld [vmem:[#allocation5 + $0x74] sm:$0xf]  ;;  %v2050_v15 = vor.u32 %v2519_v63, %v2049_v62 }
  0x43   :  { %974 = vmatpush.bf16.msrb.mxu1 %v2090_v9  ;;  %v2177_v3 = vld [vmem:[#allocation5 + $0x380] sm:$0xf]  ;;  %v2551_v4 = vld [vmem:[#allocation5 + $0x384] sm:$0xf0]  ;;  %v1787_v9 = vld [vmem:[#allocation5 + $0x78] sm:$0xf0]  ;;  %v2114_v16 = vor.u32 %v2535_v2, %v2113_v0 }
  0x44   :  { %987 = vmatpush.bf16.msrb.mxu2 %v2154_v10  ;;  %v2468_v10 = vld [vmem:[#allocation5 + $0xf4] sm:$0xf]  ;;  %v1851_v12 = vld [vmem:[#allocation5 + $0xf8] sm:$0xf0]  ;;  %v2450_v24 = vld [vmem:[#allocation5 + $0x64] sm:$0xf] }
  0x45   :  { %1000 = vmatpush.bf16.msrb.mxu3 %v2218_v14  ;;  %v2484_v13 = vld [vmem:[#allocation5 + $0x174] sm:$0xf]  ;;  %v1915_v14 = vld [vmem:[#allocation5 + $0x178] sm:$0xf0]  ;;  %v1854_v25 = vor.u32 %v2468_v10, %v1851_v12  ;;  %v1779_v27 = vld [vmem:[#allocation5 + $0x68] sm:$0xf0] }
  0x46   :  { %962 = vmatpush.bf16.msrb.mxu0 %v2018_v20  ;;  %v2500_v17 = vld [vmem:[#allocation5 + $0x1f4] sm:$0xf]  ;;  %v1979_v18 = vld [vmem:[#allocation5 + $0x1f8] sm:$0xf0]  ;;  %v2178_v20 = vor.u32 %v2551_v4, %v2177_v3  ;;  %v2466_v28 = vld [vmem:[#allocation5 + $0xe4] sm:$0xf]  ;;  %v1782_v39 = vor.u32 %v2450_v24, %v1779_v27 }
  0x47   :  { %975 = vmatpush.bf16.msrb.mxu1 %v2082_v21  ;;  %v122_v19 = vld [vmem:[#allocation2 + $0x30] sm:$0xff]  ;;  %v1790_v21 = vor.u32 %v2452_v8, %v1787_v9  ;;  %v123_v23 = vld [vmem:[#allocation2 + $0x38] sm:$0xff]  ;;  %v121_v29 = vld [vmem:[#allocation2 + $0x28] sm:$0xff]  ;;  %v1982_v30 = vor.u32 %v2500_v17, %v1979_v18  ;;  %s1715_s13 = sshll.u32 %s2954_s11, 4  ;;  %s1716_s13 = int_to_ptr.hbm [resolvable:$true] %s1715_s13 }
  0x48   :  { %988 = vmatpush.bf16.msrb.mxu2 %v2146_v22  ;;  %v120_v22 = vld [vmem:[#allocation2 + $0x20] sm:$0xff]  ;;  %v2895_v31 = vpack.c.bf16 %v122_v19, %v122_v19  ;;  %v2899_v36 = vpack.c.bf16 %v123_v23, %v123_v23  ;;  %v2901_v40 = vpack.c.bf16 %v121_v29, %v121_v29  ;;  %v2448_v43 = vld [vmem:[#allocation5 + $0x54] sm:$0xf]  ;;  %v1835_v47 = vld [vmem:[#allocation5 + $0xd8] sm:$0xf0] }
  0x49   :  { %1001 = vmatpush.bf16.msrb.mxu3 %v2210_v26  ;;  %v1918_v26 = vor.u32 %v2484_v13, %v1915_v14  ;;  %v2897_v35 = vpack.c.bf16 %v120_v22, %v120_v22  ;;  %v2498_v37 = vld [vmem:[#allocation5 + $0x1e4] sm:$0xf]  ;;  %v2480_v48 = vld [vmem:[#allocation5 + $0x154] sm:$0xf]  ;;  %v1899_v49 = vld [vmem:[#allocation5 + $0x158] sm:$0xf0] }
  0x4a   :  { %963 = vmatpush.bf16.msrb.mxu0 %v2010_v32  ;;  %v1843_v32 = vld [vmem:[#allocation5 + $0xe8] sm:$0xf0]  ;;  %v1963_v51 = vld [vmem:[#allocation5 + $0x1d8] sm:$0xf0]  ;;  %v1902_v54 = vor.u32 %v2480_v48, %v1899_v49  ;;  %v2446_v55 = vld [vmem:[#allocation5 + $0x44] sm:$0xf] }
  0x4b   :  { %976 = vmatpush.bf16.msrb.mxu1 %v2074_v33  ;;  %v2482_v33 = vld [vmem:[#allocation5 + $0x164] sm:$0xf]  ;;  %v1846_v41 = vor.u32 %v2466_v28, %v1843_v32  ;;  %v1891_v62 = vld [vmem:[#allocation5 + $0x148] sm:$0xf0]  ;;  %v2444_v4 = vld [vmem:[#allocation5 + $0x34] sm:$0xf] }
  0x4c   :  { %989 = vmatpush.bf16.msrb.mxu2 %v2138_v34  ;;  %v1907_v34 = vld [vmem:[#allocation5 + $0x168] sm:$0xf0]  ;;  %v2462_v58 = vld [vmem:[#allocation5 + $0xc4] sm:$0xf]  ;;  %v1755_v8 = vld [vmem:[#allocation5 + $0x38] sm:$0xf0] }
  0x4d   :  { %1002 = vmatpush.bf16.msrb.mxu3 %v2202_v38  ;;  %v1971_v38 = vld [vmem:[#allocation5 + $0x1e8] sm:$0xf0]  ;;  %v1910_v42 = vor.u32 %v2482_v33, %v1907_v34  ;;  %v2494_v63 = vld [vmem:[#allocation5 + $0x1c4] sm:$0xf]  ;;  %v2460_v9 = vld [vmem:[#allocation5 + $0xb4] sm:$0xf] }
  0x4e   :  { %964 = vmatpush.bf16.msrb.mxu0 %v2002_v44  ;;  %v1771_v44 = vld [vmem:[#allocation5 + $0x58] sm:$0xf0]  ;;  %v1955_v0 = vld [vmem:[#allocation5 + $0x1c8] sm:$0xf0]  ;;  %v2476_v12 = vld [vmem:[#allocation5 + $0x134] sm:$0xf] }
  0x4f   :  { %977 = vmatpush.bf16.msrb.mxu1 %v2066_v45  ;;  %v2464_v45 = vld [vmem:[#allocation5 + $0xd4] sm:$0xf]  ;;  %v1774_v52 = vor.u32 %v2448_v43, %v1771_v44  ;;  %v1958_v10 = vor.u32 %v2494_v63, %v1955_v0  ;;  %v1883_v13 = vld [vmem:[#allocation5 + $0x138] sm:$0xf0]  ;;  %v2442_v19 = vld [vmem:[#allocation5 + $0x24] sm:$0xf] }
  0x50   :  { %990 = vmatpush.bf16.msrb.mxu2 %v2130_v46  ;;  %v1974_v46 = vor.u32 %v2498_v37, %v1971_v38  ;;  %v1838_v53 = vor.u32 %v2464_v45, %v1835_v47  ;;  %v2492_v14 = vld [vmem:[#allocation5 + $0x1b4] sm:$0xf]  ;;  %v1886_v18 = vor.u32 %v2476_v12, %v1883_v13  ;;  %v1811_v23 = vld [vmem:[#allocation5 + $0xa8] sm:$0xf0]  ;;  %v2474_v24 = vld [vmem:[#allocation5 + $0x124] sm:$0xf] }
  0x51   :  { %1003 = vmatpush.bf16.msrb.mxu3 %v2194_v50  ;;  %v2496_v50 = vld [vmem:[#allocation5 + $0x1d4] sm:$0xf]  ;;  %v1939_v27 = vld [vmem:[#allocation5 + $0x1a8] sm:$0xf0]  ;;  %v1739_v33 = vld [vmem:[#allocation5 + $0x18] sm:$0xf0] }
  0x52   :  { %965 = vmatpush.bf16.msrb.mxu0 %v1994_v56  ;;  %v1763_v56 = vld [vmem:[#allocation5 + $0x48] sm:$0xf0]  ;;  %v1966_v59 = vor.u32 %v2496_v50, %v1963_v51  ;;  %v2440_v32 = vld [vmem:[#allocation5 + $0x14] sm:$0xf]  ;;  %v1803_v38 = vld [vmem:[#allocation5 + $0x98] sm:$0xf0] }
  0x53   :  { %978 = vmatpush.bf16.msrb.mxu1 %v2058_v60  ;;  %v1827_v60 = vld [vmem:[#allocation5 + $0xc8] sm:$0xf0]  ;;  %v2456_v34 = vld [vmem:[#allocation5 + $0x94] sm:$0xf]  ;;  %v1931_v43 = vld [vmem:[#allocation5 + $0x198] sm:$0xf0]  ;;  %v1742_v44 = vor.u32 %v2440_v32, %v1739_v33 }
  0x54   :  { %991 = vmatpush.bf16.msrb.mxu2 %v2122_v61  ;;  %v2478_v61 = vld [vmem:[#allocation5 + $0x144] sm:$0xf]  ;;  %v1830_v2 = vor.u32 %v2462_v58, %v1827_v60  ;;  %v1806_v47 = vor.u32 %v2456_v34, %v1803_v38  ;;  %v1795_v50 = vld [vmem:[#allocation5 + $0x88] sm:$0xf0]  ;;  %v2043_v58 = vld [vmem:[#allocation5 + $0x278] sm:$0xf0] }
  0x55   :  { %1004 = vmatpush.bf16.msrb.mxu3 %v2186_v1  ;;  %v1766_v1 = vor.u32 %v2446_v55, %v1763_v56  ;;  %v1894_v3 = vor.u32 %v2478_v61, %v1891_v62  ;;  %v2438_v45 = vld [vmem:[#allocation5 + $0x4] sm:$0xf]  ;;  %v1923_v55 = vld [vmem:[#allocation5 + $0x188] sm:$0xf0]  ;;  %v2516_v56 = vld [vmem:[#allocation5 + $0x274] sm:$0xf] }
  0x56   :  { %966 = vmatpush.bf16.msrb.mxu0 %v1986_v11  ;;  %v1819_v11 = vld [vmem:[#allocation5 + $0xb8] sm:$0xf0]  ;;  %v2454_v49 = vld [vmem:[#allocation5 + $0x84] sm:$0xf]  ;;  %v2548_v62 = vld [vmem:[#allocation5 + $0x374] sm:$0xf] }
  0x57   :  { %979 = vmatpush.bf16.msrb.mxu1 %v2050_v15  ;;  %v1947_v15 = vld [vmem:[#allocation5 + $0x1b8] sm:$0xf0]  ;;  %v1822_v17 = vor.u32 %v2460_v9, %v1819_v11  ;;  %v2470_v51 = vld [vmem:[#allocation5 + $0x104] sm:$0xf]  ;;  %v1798_v0 = vor.u32 %v2454_v49, %v1795_v50  ;;  %v2035_v12 = vld [vmem:[#allocation5 + $0x268] sm:$0xf0] }
  0x58   :  { %992 = vmatpush.bf16.msrb.mxu2 %v2114_v16  ;;  %v1758_v16 = vor.u32 %v2444_v4, %v1755_v8  ;;  %v1950_v22 = vor.u32 %v2492_v14, %v1947_v15  ;;  %v2107_v61 = vld [vmem:[#allocation5 + $0x2f8] sm:$0xf0]  ;;  %v2046_v8 = vor.u32 %v2516_v56, %v2043_v58  ;;  %v2514_v11 = vld [vmem:[#allocation5 + $0x264] sm:$0xf]  ;;  %v2099_v15 = vld [vmem:[#allocation5 + $0x2e8] sm:$0xf0] }
  0x59   :  { %1005 = vmatpush.bf16.msrb.mxu3 %v2178_v20  ;;  %967 = vmatmul.bf16.vlgmr.msrb.gmra.mxu0 %v2897_v35  ;;  %v1747_v20 = vld [vmem:[#allocation5 + $0x28] sm:$0xf0]  ;;  %v2171_v63 = vld [vmem:[#allocation5 + $0x378] sm:$0xf0]  ;;  %v2530_v13 = vld [vmem:[#allocation5 + $0x2e4] sm:$0xf] }
  0x5a   :  { %1011 = vmatpush.bf16.msra.mxu0 %v1790_v21  ;;  %980 = vmatmul.bf16.vlgmr.msrb.gmra.mxu1 %v2901_v40  ;;  %v2458_v21 = vld [vmem:[#allocation5 + $0xa4] sm:$0xf]  ;;  %v1750_v28 = vor.u32 %v2442_v19, %v1747_v20  ;;  %v2227_v19 = vld [vmem:[#allocation5 + $0x3e8] sm:$0xf0]  ;;  %v2038_v20 = vor.u32 %v2514_v11, %v2035_v12  ;;  %v2219_v32 = vld [vmem:[#allocation5 + $0x3d8] sm:$0xf0] }
  0x5b   :  { %1024 = vmatpush.bf16.msra.mxu1 %v1854_v25  ;;  %993 = vmatmul.bf16.vlgmr.msrb.gmra.mxu2 %v2895_v31  ;;  %v1875_v25 = vld [vmem:[#allocation5 + $0x128] sm:$0xf0]  ;;  %v1814_v29 = vor.u32 %v2458_v21, %v1811_v23  ;;  %v2102_v21 = vor.u32 %v2530_v13, %v2099_v15  ;;  %v2512_v23 = vld [vmem:[#allocation5 + $0x254] sm:$0xf]  ;;  %v2510_v38 = vld [vmem:[#allocation5 + $0x244] sm:$0xf] }
  0x5c   :  { %1037 = vmatpush.bf16.msra.mxu2 %v1918_v26  ;;  %1006 = vmatmul.bf16.vlgmr.msrb.gmra.mxu3 %v2899_v36  ;;  %v2490_v26 = vld [vmem:[#allocation5 + $0x1a4] sm:$0xf]  ;;  %v2524_v49 = vld [vmem:[#allocation5 + $0x2b4] sm:$0xf]  ;;  %v1995_v12 = vld [vmem:[#allocation5 + $0x218] sm:$0xf0] }
  0x5d   :  { %1050 = vmatpush.bf16.msra.mxu3 %v1982_v30  ;;  %v1878_v30 = vor.u32 %v2474_v24, %v1875_v25  ;;  %v1942_v37 = vor.u32 %v2490_v26, %v1939_v27  ;;  %v2027_v24 = vld [vmem:[#allocation5 + $0x258] sm:$0xf0]  ;;  %v2528_v25 = vld [vmem:[#allocation5 + $0x2d4] sm:$0xf] }
  0x5e   :  { %1012 = vmatpush.bf16.msra.mxu0 %v1782_v39  ;;  %v2472_v39 = vld [vmem:[#allocation5 + $0x114] sm:$0xf]  ;;  %v2091_v27 = vld [vmem:[#allocation5 + $0x2d8] sm:$0xf0]  ;;  %v2030_v33 = vor.u32 %v2512_v23, %v2027_v24  ;;  %v2502_v23 = vld [vmem:[#allocation5 + $0x204] sm:$0xf] }
  0x5f   :  { %1025 = vmatpush.bf16.msra.mxu1 %v1846_v41  ;;  %v1867_v41 = vld [vmem:[#allocation5 + $0x118] sm:$0xf0]  ;;  %v2094_v34 = vor.u32 %v2528_v25, %v2091_v27  ;;  %v2504_v11 = vld [vmem:[#allocation5 + $0x214] sm:$0xf]  ;;  %v1987_v24 = vld [vmem:[#allocation5 + $0x208] sm:$0xf0] }
  0x60   :  { %1038 = vmatpush.bf16.msra.mxu2 %v1910_v42  ;;  %v2488_v42 = vld [vmem:[#allocation5 + $0x194] sm:$0xf]  ;;  %v1870_v48 = vor.u32 %v2472_v39, %v1867_v41  ;;  %v2019_v39 = vld [vmem:[#allocation5 + $0x248] sm:$0xf0]  ;;  %v2059_v15 = vld [vmem:[#allocation5 + $0x298] sm:$0xf0] }
  0x61   :  { %1051 = vmatpush.bf16.msra.mxu3 %v1974_v46  ;;  %v1731_v46 = vld [vmem:[#allocation5 + $0x8] sm:$0xf0]  ;;  %v2520_v13 = vld [vmem:[#allocation5 + $0x294] sm:$0xf]  ;;  %v2518_v25 = vld [vmem:[#allocation5 + $0x284] sm:$0xf] }
  0x62   :  { %1013 = vmatpush.bf16.msra.mxu0 %v1774_v52  ;;  %v1934_v52 = vor.u32 %v2488_v42, %v1931_v43  ;;  %v1734_v60 = vor.u32 %v2438_v45, %v1731_v46  ;;  %v2083_v42 = vld [vmem:[#allocation5 + $0x2c8] sm:$0xf0]  ;;  %v2542_v43 = vld [vmem:[#allocation5 + $0x344] sm:$0xf] }
  0x63   :  { %1026 = vmatpush.bf16.msra.mxu1 %v1838_v53  ;;  %v1859_v53 = vld [vmem:[#allocation5 + $0x108] sm:$0xf0]  ;;  %v2558_v45 = vld [vmem:[#allocation5 + $0x3c4] sm:$0xf] }
  0x64   :  { %1039 = vmatpush.bf16.msra.mxu2 %v1902_v54  ;;  %v2486_v54 = vld [vmem:[#allocation5 + $0x184] sm:$0xf]  ;;  %v2051_v27 = vld [vmem:[#allocation5 + $0x288] sm:$0xf0] }
  0x65   :  { %1052 = vmatpush.bf16.msra.mxu3 %v1966_v59  ;;  %v2532_v59 = vld [vmem:[#allocation5 + $0x2f4] sm:$0xf]  ;;  %v1926_v4 = vor.u32 %v2486_v54, %v1923_v55  ;;  %v2203_v55 = vld [vmem:[#allocation5 + $0x3b8] sm:$0xf0] }
  0x66   :  { %1014 = vmatpush.bf16.msra.mxu0 %v1766_v1  ;;  %v1862_v1 = vor.u32 %v2470_v51, %v1859_v53  ;;  %v2110_v9 = vor.u32 %v2532_v59, %v2107_v61  ;;  %v2075_v51 = vld [vmem:[#allocation5 + $0x2b8] sm:$0xf0]  ;;  %v2556_v54 = vld [vmem:[#allocation5 + $0x3b4] sm:$0xf]  ;;  %v2003_v61 = vld [vmem:[#allocation5 + $0x228] sm:$0xf0] }
  0x67   :  { %1027 = vmatpush.bf16.msra.mxu1 %v1830_v2  ;;  %v2564_v2 = vld [vmem:[#allocation5 + $0x3f4] sm:$0xf]  ;;  %v2139_v53 = vld [vmem:[#allocation5 + $0x338] sm:$0xf0]  ;;  %v2078_v58 = vor.u32 %v2524_v49, %v2075_v51 }
  0x68   :  { %1040 = vmatpush.bf16.msra.mxu2 %v1894_v3  ;;  %v2235_v3 = vld [vmem:[#allocation5 + $0x3f8] sm:$0xf0] }
  0x69   :  { %1053 = vmatpush.bf16.msra.mxu3 %v1958_v10  ;;  %v2174_v10 = vor.u32 %v2548_v62, %v2171_v63  ;;  %v2238_v14 = vor.u32 %v2564_v2, %v2235_v3  ;;  %v2522_v62 = vld [vmem:[#allocation5 + $0x2a4] sm:$0xf]  ;;  %v2206_v63 = vor.u32 %v2556_v54, %v2203_v55  ;;  %v2131_v2 = vld [vmem:[#allocation5 + $0x328] sm:$0xf0]  ;;  %v2569_v49 = vld [vmem:[#allocation7 + $0x18] sm:$0xff] }
  0x6a   :  { %1015 = vmatpush.bf16.msra.mxu0 %v1758_v16  ;;  %v2546_v16 = vld [vmem:[#allocation5 + $0x364] sm:$0xf] }
  0x6b   :  { %1028 = vmatpush.bf16.msra.mxu1 %v1822_v17  ;;  %v2163_v17 = vld [vmem:[#allocation5 + $0x368] sm:$0xf0]  ;;  %v2554_v3 = vld [vmem:[#allocation5 + $0x3a4] sm:$0xf] }
  0x6c   :  { %1041 = vmatpush.bf16.msra.mxu2 %v1886_v18  ;;  %v2562_v18 = vld [vmem:[#allocation5 + $0x3e4] sm:$0xf] }
  0x6d   :  { %1054 = vmatpush.bf16.msra.mxu3 %v1950_v22  ;;  %v2166_v22 = vor.u32 %v2546_v16, %v2163_v17  ;;  %v2230_v26 = vor.u32 %v2562_v18, %v2227_v19  ;;  %v2536_v16 = vld [vmem:[#allocation5 + $0x314] sm:$0xf]  ;;  %v2123_v17 = vld [vmem:[#allocation5 + $0x318] sm:$0xf0] }
  0x6e   :  { %1016 = vmatpush.bf16.msra.mxu0 %v1750_v28  ;;  %v2544_v28 = vld [vmem:[#allocation5 + $0x354] sm:$0xf]  ;;  %v2187_v19 = vld [vmem:[#allocation5 + $0x398] sm:$0xf0] }
  0x6f   :  { %1029 = vmatpush.bf16.msra.mxu1 %v1814_v29  ;;  %v2155_v29 = vld [vmem:[#allocation5 + $0x358] sm:$0xf0]  ;;  %v2552_v18 = vld [vmem:[#allocation5 + $0x394] sm:$0xf] }
  0x70   :  { %1042 = vmatpush.bf16.msra.mxu2 %v1878_v30  ;;  %v2560_v30 = vld [vmem:[#allocation5 + $0x3d4] sm:$0xf] }
  0x71   :  { %1055 = vmatpush.bf16.msra.mxu3 %v1942_v37  ;;  %v2158_v37 = vor.u32 %v2544_v28, %v2155_v29  ;;  %v2222_v41 = vor.u32 %v2560_v30, %v2219_v32  ;;  %v2534_v28 = vld [vmem:[#allocation5 + $0x304] sm:$0xf]  ;;  %v2115_v29 = vld [vmem:[#allocation5 + $0x308] sm:$0xf0] }
  0x72   :  { %1017 = vmatpush.bf16.msra.mxu0 %v1742_v44  ;;  %v2147_v44 = vld [vmem:[#allocation5 + $0x348] sm:$0xf0]  ;;  %v2550_v30 = vld [vmem:[#allocation5 + $0x384] sm:$0xf] }
  0x73   :  { %1030 = vmatpush.bf16.msra.mxu1 %v1806_v47  ;;  %v2508_v47 = vld [vmem:[#allocation5 + $0x234] sm:$0xf]  ;;  %v2179_v32 = vld [vmem:[#allocation5 + $0x388] sm:$0xf0] }
  0x74   :  { %1043 = vmatpush.bf16.msra.mxu2 %v1870_v48  ;;  %v2011_v48 = vld [vmem:[#allocation5 + $0x238] sm:$0xf0] }
  0x75   :  { %1056 = vmatpush.bf16.msra.mxu3 %v1934_v52  ;;  %v2540_v52 = vld [vmem:[#allocation5 + $0x334] sm:$0xf]  ;;  %v2014_v56 = vor.u32 %v2508_v47, %v2011_v48  ;;  %v2570_v47 = vld [vmem:[#allocation7 + $0x20] sm:$0xff] }
  0x76   :  { %1018 = vmatpush.bf16.msra.mxu0 %v1734_v60  ;;  %v2142_v59 = vor.u32 %v2540_v52, %v2139_v53  ;;  %v2506_v60 = vld [vmem:[#allocation5 + $0x224] sm:$0xf]  ;;  %v2568_v52 = vld [vmem:[#allocation7 + $0x10] sm:$0xff] }
  0x77   :  { %1031 = vmatpush.bf16.msra.mxu1 %v1798_v0  ;;  %v2067_v0 = vld [vmem:[#allocation5 + $0x2a8] sm:$0xf0] }
  0x78   :  { %1044 = vmatpush.bf16.msra.mxu2 %v1862_v1  ;;  %v2538_v1 = vld [vmem:[#allocation5 + $0x324] sm:$0xf] }
  0x79   :  { %1057 = vmatpush.bf16.msra.mxu3 %v1926_v4  ;;  %1019 = vmatmul.bf16.vlgmr.msra.gmra.mxu0 %v2886_v5  ;;  %v2211_v5 = vld [vmem:[#allocation5 + $0x3c8] sm:$0xf0] }
  0x7a   :  { %1063 = vmatpush.bf16.msrb.mxu0 %v2046_v8  ;;  %1032 = vmatmul.bf16.vlgmr.msra.gmra.mxu1 %v2890_v7  ;;  %v2150_v7 = vor.u32 %v2542_v43, %v2147_v44  ;;  %v2214_v50 = vor.u32 %v2558_v45, %v2211_v5  ;;  %v2195_v4 = vld [vmem:[#allocation5 + $0x3a8] sm:$0xf0]  ;;  %v2006_v8 = vor.u32 %v2506_v60, %v2003_v61  ;;  %v2573_v44 = vld [vmem:[#allocation7 + $0x38] sm:$0xff] }
  0x7b   :  { %1076 = vmatpush.bf16.msrb.mxu1 %v2110_v9  ;;  %1045 = vmatmul.bf16.vlgmr.msra.gmra.mxu2 %v2883_v57  ;;  %v2526_v57 = vld [vmem:[#allocation5 + $0x2c4] sm:$0xf]  ;;  %v2070_v9 = vor.u32 %v2522_v62, %v2067_v0 }
  0x7c   :  { %1089 = vmatpush.bf16.msrb.mxu2 %v2174_v10  ;;  %1058 = vmatmul.bf16.vlgmr.msra.gmra.mxu3 %v2888_v6  ;;  %v2022_v6 = vor.u32 %v2510_v38, %v2019_v39  ;;  %v2086_v46 = vor.u32 %v2526_v57, %v2083_v42  ;;  %v2134_v10 = vor.u32 %v2538_v1, %v2131_v2  ;;  %v2918_v42 = vld [vmem:[%s2946_s3] sm:$0x3] }
  0x7d   :  { %1102 = vmatpush.bf16.msrb.mxu3 %v2238_v14  ;;  %v2198_v14 = vor.u32 %v2554_v3, %v2195_v4  ;;  %v2182_v38 = vor.u32 %v2550_v30, %v2179_v32  ;;  %v263_v45 = vperm.slane %v2918_v42, 0 }
  0x7e   :  { %1064 = vmatpush.bf16.msrb.mxu0 %v2038_v20  ;;  %v1998_v20 = vor.u32 %v2504_v11, %v1995_v12 }
  0x7f   :  { %1077 = vmatpush.bf16.msrb.mxu1 %v2102_v21  ;;  %v2062_v21 = vor.u32 %v2520_v13, %v2059_v15 }
  0x80   :  { %1090 = vmatpush.bf16.msrb.mxu2 %v2166_v22  ;;  %v2126_v22 = vor.u32 %v2536_v16, %v2123_v17 }
  0x81   :  { %1103 = vmatpush.bf16.msrb.mxu3 %v2230_v26  ;;  %v2190_v26 = vor.u32 %v2552_v18, %v2187_v19 }
  0x82   :  { %1065 = vmatpush.bf16.msrb.mxu0 %v2030_v33  ;;  %v1990_v33 = vor.u32 %v2502_v23, %v1987_v24 }
  0x83   :  { %1078 = vmatpush.bf16.msrb.mxu1 %v2094_v34  ;;  %v2054_v34 = vor.u32 %v2518_v25, %v2051_v27  ;;  %v2581_v25 = vld [vmem:[#allocation7 + $0x78] sm:$0xff] }
  0x84   :  { %1091 = vmatpush.bf16.msrb.mxu2 %v2158_v37  ;;  %v2118_v37 = vor.u32 %v2534_v28, %v2115_v29  ;;  %v264_v28 = vperm.slane %v2918_v42, 1  ;;  %v2580_v29 = vld [vmem:[#allocation7 + $0x70] sm:$0xff]  ;;  %v2575_v42 = vld [vmem:[#allocation7 + $0x48] sm:$0xff] }
  0x85   :  { %1104 = vmatpush.bf16.msrb.mxu3 %v2222_v41 }
  0x86   :  { %1066 = vmatpush.bf16.msrb.mxu0 %v2022_v6  ;;  %v2572_v6 = vld [vmem:[#allocation7 + $0x30] sm:$0xff] }
  0x87   :  { %1079 = vmatpush.bf16.msrb.mxu1 %v2086_v46  ;;  %v2571_v46 = vld [vmem:[#allocation7 + $0x28] sm:$0xff] }
  0x88   :  { %1092 = vmatpush.bf16.msrb.mxu2 %v2150_v7 }
  0x89   :  { %1105 = vmatpush.bf16.msrb.mxu3 %v2214_v50 }
  0x8a   :  { %1067 = vmatpush.bf16.msrb.mxu0 %v2014_v56  ;;  %v2567_v56 = vld [vmem:[#allocation7 + $0x8] sm:$0xff] }
  0x8b   :  { %1080 = vmatpush.bf16.msrb.mxu1 %v2078_v58 }
  0x8c   :  { %1093 = vmatpush.bf16.msrb.mxu2 %v2142_v59 }
  0x8d   :  { %1106 = vmatpush.bf16.msrb.mxu3 %v2206_v63  ;;  %v2566_v63 = vld [vmem:[#allocation7] sm:$0xff] }
  0x8e   :  { %1068 = vmatpush.bf16.msrb.mxu0 %v2006_v8 }
  0x8f   :  { %1081 = vmatpush.bf16.msrb.mxu1 %v2070_v9 }
  0x90   :  { %1094 = vmatpush.bf16.msrb.mxu2 %v2134_v10 }
  0x91   :  { %1107 = vmatpush.bf16.msrb.mxu3 %v2198_v14 }
  0x92   :  { %1069 = vmatpush.bf16.msrb.mxu0 %v1998_v20 }
  0x93   :  { %1082 = vmatpush.bf16.msrb.mxu1 %v2062_v21 }
  0x94   :  { %1095 = vmatpush.bf16.msrb.mxu2 %v2126_v22 }
  0x95   :  { %1108 = vmatpush.bf16.msrb.mxu3 %v2190_v26 }
  0x96   :  { %1070 = vmatpush.bf16.msrb.mxu0 %v1990_v33 }
  0x97   :  { %1083 = vmatpush.bf16.msrb.mxu1 %v2054_v34  ;;  %v2579_v34 = vld [vmem:[#allocation7 + $0x68] sm:$0xff] }
  0x98   :  { %1096 = vmatpush.bf16.msrb.mxu2 %v2118_v37 }
  0x99   :  { %1109 = vmatpush.bf16.msrb.mxu3 %v2182_v38  ;;  %1071 = vmatmul.bf16.vlgmr.msrb.gmra.mxu0 %v2897_v35  ;;  %v2578_v38 = vld [vmem:[#allocation7 + $0x60] sm:$0xff] }
  0x9a   :  { %1084 = vmatmul.bf16.vlgmr.msrb.gmra.mxu1 %v2901_v40  ;;  %1289 = vmatpush.bf16.msra.mxu0 %v2573_v44  ;;  %v2576_v44 = vld [vmem:[#allocation7 + $0x50] sm:$0xff] }
  0x9b   :  { %1097 = vmatmul.bf16.vlgmr.msrb.gmra.mxu2 %v2895_v31  ;;  %1302 = vmatpush.bf16.msra.mxu1 %v2581_v25 }
  0x9c   :  { %1110 = vmatmul.bf16.vlgmr.msrb.gmra.mxu3 %v2899_v36 }
  0x9e   :  { %1290 = vmatpush.bf16.msra.mxu0 %v2572_v6 }
  0x9f   :  { %1303 = vmatpush.bf16.msra.mxu1 %v2580_v29 }
  0xa2   :  { %1291 = vmatpush.bf16.msra.mxu0 %v2571_v46  ;;  %v2574_v46 = vld [vmem:[#allocation7 + $0x40] sm:$0xff] }
  0xa3   :  { %1304 = vmatpush.bf16.msra.mxu1 %v2579_v34  ;;  %v2591_v34 = vld [vmem:[#allocation8 + $0x44] sm:$0xf0] }
  0xa6   :  { %1292 = vmatpush.bf16.msra.mxu0 %v2570_v47 }
  0xa7   :  { %1305 = vmatpush.bf16.msra.mxu1 %v2578_v38 }
  0xaa   :  { %1293 = vmatpush.bf16.msra.mxu0 %v2569_v49 }
  0xae   :  { %1294 = vmatpush.bf16.msra.mxu0 %v2568_v52 }
  0xb2   :  { %1295 = vmatpush.bf16.msra.mxu0 %v2567_v56 }
  0xb6   :  { %v916_v39 = vpop.f32.mrf.mxu0  ;;  %1296 = vmatpush.bf16.msra.mxu0 %v2566_v63 }
  0xb7   :  { %v929_v57 = vpop.f32.mrf.mxu1  ;;  %v917_v31 = vadd.f32 %v916_v39, %v263_v45 }
  0xb9   :  { %v930_v7 = vadd.f32 %v929_v57, %v917_v31  ;;  %v2577_v57 = vld [vmem:[#allocation7 + $0x58] sm:$0xff] }
  0xba   :  { %1306 = vmatpush.bf16.msra.mxu1 %v2577_v57 }
  0xbe   :  { %v942_v41 = vpop.f32.mrf.mxu2  ;;  %v918_v5 = vpop.f32.mrf.mxu0  ;;  %1307 = vmatpush.bf16.msra.mxu1 %v2576_v44  ;;  %v2588_v44 = vld [vmem:[#allocation8 + $0x34] sm:$0xf] }
  0xbf   :  { %v955_v43 = vpop.f32.mrf.mxu3  ;;  %v931_v35 = vpop.f32.mrf.mxu1  ;;  %v943_v48 = vadd.f32 %v942_v41, %v930_v7 }
  0xc1   :  { %v956_v50 = vadd.f32 %v955_v43, %v943_v48 }
  0xc2   :  { %1308 = vmatpush.bf16.msra.mxu1 %v2575_v42 }
  0xc6   :  { %v944_v40 = vpop.f32.mrf.mxu2  ;;  %1309 = vmatpush.bf16.msra.mxu1 %v2574_v46 }
  0xc7   :  { %v957_v36 = vpop.f32.mrf.mxu3 }
  0xd6   :  { %v968_v51 = vpop.f32.mrf.mxu0 }
  0xd7   :  { %v969_v53 = vadd.f32 %v968_v51, %v956_v50  ;;  %v981_v54 = vpop.f32.mrf.mxu1 }
  0xd9   :  { %v982_v55 = vadd.f32 %v981_v54, %v969_v53 }
  0xde   :  { %v994_v58 = vpop.f32.mrf.mxu2  ;;  %v970_v62 = vpop.f32.mrf.mxu0 }
  0xdf   :  { %v995_v59 = vadd.f32 %v994_v58, %v982_v55  ;;  %v1007_v60 = vpop.f32.mrf.mxu3  ;;  %v983_v0 = vpop.f32.mrf.mxu1 }
  0xe1   :  { %v1008_v61 = vadd.f32 %v1007_v60, %v995_v59 }
  0xe3   :  { %v2239_v1 = vmul.f32 -1.442695, %v1008_v61 }
  0xe5   :  { %2626 = vpow2.f32 %v2239_v1 }
  0xe6   :  { %v996_v2 = vpop.f32.mrf.mxu2 }
  0xe7   :  { %v1009_v3 = vpop.f32.mrf.mxu3 }
  0xeb   :  { %v2627_v4 = vpop.eup %2626 }
  0xec   :  { %v1121_v8 = vadd.f32 1.0, %v2627_v4  ;;  %v1353_v4 = vld [vmem:[%s2950_s7] sm:$0xf] }
  0xed   :  { %1355 = vst [vmem:[#allocation1] ss:$4 sm:$0xff] %v1353_v4 }
  0xee   :  { %2628 = vrcp.f32 %v1121_v8  ;;  %v1134_v13 = vand.u32 2147483648, %v1121_v8  ;;  %vm1128_vm0 = vweird.f32 %v1121_v8  ;;  %v1132_v16 = vand.u32 2147483647, %v1121_v8 }
  0xf0   :  { %v1135_v18 = vor.u32 1.1754944e-38, %v1134_v13  ;;  %vm1133_vm3 = vcmp.eq.f32.partialorder %v1132_v16, 8.507059e+37  ;;  %v2368_v16 = vld [vmem:[#allocation8 + $0x78] sm:$0xf0] }
  0xf4   :  { %v2629_v9 = vpop.eup %2628 }
  0xf5   :  { %v1124_v10 = vmul.f32 %v2629_v9, %v1121_v8  ;;  %vm1129_vm1 = vweird.f32 %v2629_v9  ;;  %v1356_v8 = vld.sshfl [vmem:[#allocation1] sm:$0xff pattern:$0x73625140] }
  0xf6   :  { %v1020_v12 = vpop.f32.mrf.mxu0  ;;  %vm1130_vm2 = vmor %vm1128_vm0, %vm1129_vm1 }
  0xf7   :  { %v1125_v11 = vsub.f32 1.0, %v1124_v10  ;;  %v1033_v14 = vpop.f32.mrf.mxu1  ;;  %v1021_v33 = vadd.f32 %v1020_v12, %v264_v28  ;;  %v1363_v10 = vsel %vm1362_vm8, %v1356_v8, 0  ;;  %v2597_v12 = vld [vmem:[#allocation8 + $0x74] sm:$0xf0]  ;;  %v2592_v28 = vld [vmem:[#allocation8 + $0x54] sm:$0xf] }
  0xf8   :  { %1374 = vmatpush.bf16.msra.mxu2 %v1363_v10 }
  0xf9   :  { %v1126_v15 = vmul.f32 %v2629_v9, %v1125_v11  ;;  %v1034_v37 = vadd.f32 %v1033_v14, %v1021_v33  ;;  %v1357_v11 = vld.sshfl [vmem:[#allocation1 + $0x8] sm:$0xff pattern:$0x73625140] }
  0xfa   :  { %v1365_v13 = vsel %vm1362_vm8, %v1357_v11, 0  ;;  %v2342_v33 = vld [vmem:[#allocation8 + $0x40] sm:$0xf] }
  0xfb   :  { %v1127_v17 = vadd.f32 %v2629_v9, %v1126_v15  ;;  %v2596_v15 = vld [vmem:[#allocation8 + $0x74] sm:$0xf]  ;;  %1387 = vmatpush.bf16.msra.mxu3 %v1365_v13  ;;  %v2343_v38 = vor.u32 %v2591_v34, %v2342_v33 }
  0xfc   :  { %v2600_v33 = vld [vmem:[#allocation10 + $0x10] sm:$0xff] }
  0xfd   :  { %v1131_v20 = vsel %vm1130_vm2, %v2629_v9, %v1127_v17  ;;  %v2366_v9 = vld [vmem:[#allocation8 + $0x70] sm:$0xf]  ;;  %v2371_v17 = vor.u32 %v2596_v15, %v2368_v16 }
  0xfe   :  { %v1046_v19 = vpop.f32.mrf.mxu2  ;;  %v1136_v22 = vsel %vm1133_vm3, %v1135_v18, %v1131_v20  ;;  %v1022_v24 = vpop.f32.mrf.mxu0  ;;  %v2367_v14 = vor.u32 %v2597_v12, %v2366_v9  ;;  %v2358_v18 = vld [vmem:[#allocation8 + $0x60] sm:$0xf]  ;;  %v2594_v20 = vld [vmem:[#allocation8 + $0x64] sm:$0xf]  ;;  %v2608_v34 = vld [vmem:[#allocation10 + $0x50] sm:$0xff] }
  0xff   :  { %v1059_v21 = vpop.f32.mrf.mxu3  ;;  %v1153_v23 = vmul.f32 %v1136_v22, %v1008_v61  ;;  %v1035_v26 = vpop.f32.mrf.mxu1  ;;  %v1047_v39 = vadd.f32 %v1046_v19, %v1034_v37  ;;  %v2595_v19 = vld [vmem:[#allocation8 + $0x64] sm:$0xf0]  ;;  %1486 = vmatpush.bf16.msrb.mxu3 %v2371_v17  ;;  %v2360_v22 = vld [vmem:[#allocation8 + $0x68] sm:$0xf0]  ;;  %v124_v24 = vld [vmem:[%s2944_s1] sm:$0xff] }
 0x100   :  { %1473 = vmatpush.bf16.msrb.mxu2 %v2367_v14  ;;  %v1352_v25 = vpack.c.bf16 %v124_v24, %v124_v24  ;;  %v2350_v26 = vld [vmem:[#allocation8 + $0x50] sm:$0xf]  ;;  %v2590_v37 = vld [vmem:[#allocation8 + $0x44] sm:$0xf] }
 0x101   :  { %v1155_v27 = vpack.c.bf16 %v1153_v23, %v1153_v23  ;;  %v1060_v41 = vadd.f32 %v1059_v21, %v1047_v39  ;;  %v2359_v21 = vor.u32 %v2595_v19, %v2358_v18  ;;  %v2363_v23 = vor.u32 %v2594_v20, %v2360_v22  ;;  %v2344_v39 = vld [vmem:[#allocation8 + $0x48] sm:$0xf0]  ;;  %v2605_v22 = vld [vmem:[#allocation10 + $0x38] sm:$0xff]  ;;  %v2604_v24 = vld [vmem:[#allocation10 + $0x30] sm:$0xff] }
 0x102   :  { %2306 = vmatmul.msk.bf16.vlgmr.msra.gmra.mxu2 %vm1358_vm9, %v1352_v25  ;;  %2307 = vmatmul.msk.bf16.vlgmr.msra.gmra.mxu3 %vm1358_vm9, %v1352_v25  ;;  %v2347_v57 = vor.u32 %v2590_v37, %v2344_v39  ;;  %v2612_v25 = vld [vmem:[#allocation10 + $0x70] sm:$0xff]  ;;  %v1499_v37 = vld [vmem:[%s2951_s8] sm:$0x3]  ;;  %v2607_v39 = vld [vmem:[#allocation10 + $0x48] sm:$0xff] }
 0x103   :  { %1297 = vmatmul.bf16.vlgmr.msra.gmra.mxu0 %v1155_v27  ;;  %v2593_v27 = vld [vmem:[#allocation8 + $0x54] sm:$0xf0]  ;;  %1487 = vmatpush.bf16.msrb.mxu3 %v2363_v23 }
 0x104   :  { %1474 = vmatpush.bf16.msrb.mxu2 %v2359_v21  ;;  %v2351_v29 = vor.u32 %v2593_v27, %v2350_v26  ;;  %v2613_v23 = vld [vmem:[#allocation10 + $0x78] sm:$0xff]  ;;  %1681 = vmatpush.bf16.msrb.mxu0 %v2605_v22  ;;  %v2603_v26 = vld [vmem:[#allocation10 + $0x28] sm:$0xff] }
 0x105   :  { %1694 = vmatpush.bf16.msrb.mxu1 %v2613_v23  ;;  %v2611_v27 = vld [vmem:[#allocation10 + $0x68] sm:$0xff] }
 0x106   :  { %v1048_v30 = vpop.f32.mrf.mxu2 }
 0x107   :  { %v1061_v32 = vpop.f32.mrf.mxu3  ;;  %v2352_v30 = vld [vmem:[#allocation8 + $0x58] sm:$0xf0] }
 0x108   :  { %v2355_v32 = vor.u32 %v2592_v28, %v2352_v30  ;;  %1475 = vmatpush.bf16.msrb.mxu2 %v2351_v29  ;;  %1682 = vmatpush.bf16.msrb.mxu0 %v2604_v24  ;;  %v2602_v28 = vld [vmem:[#allocation10 + $0x20] sm:$0xff]  ;;  %v2601_v30 = vld [vmem:[#allocation10 + $0x18] sm:$0xff] }
 0x109   :  { %1695 = vmatpush.bf16.msrb.mxu1 %v2612_v25  ;;  %v2610_v29 = vld [vmem:[#allocation10 + $0x60] sm:$0xff] }
 0x10a   :  { %1488 = vmatpush.bf16.msrb.mxu3 %v2355_v32  ;;  %v2609_v32 = vld [vmem:[#allocation10 + $0x58] sm:$0xff] }
 0x10c   :  { %1476 = vmatpush.bf16.msrb.mxu2 %v2343_v38  ;;  %1683 = vmatpush.bf16.msrb.mxu0 %v2603_v26  ;;  %v2599_v38 = vld [vmem:[#allocation10 + $0x8] sm:$0xff] }
 0x10d   :  { %1696 = vmatpush.bf16.msrb.mxu1 %v2611_v27 }
 0x10e   :  { %1489 = vmatpush.bf16.msrb.mxu3 %v2347_v57  ;;  %v1501_v57 = vperm.slane %v1499_v37, 0 }
 0x110   :  { %1684 = vmatpush.bf16.msrb.mxu0 %v2602_v28 }
 0x111   :  { %1697 = vmatpush.bf16.msrb.mxu1 %v2610_v29 }
 0x114   :  { %1685 = vmatpush.bf16.msrb.mxu0 %v2601_v30 }
 0x115   :  { %1698 = vmatpush.bf16.msrb.mxu1 %v2609_v32 }
 0x116   :  { %v1072_v43 = vpop.f32.mrf.mxu0 }
 0x117   :  { %v1085_v45 = vpop.f32.mrf.mxu1  ;;  %v1073_v5 = vadd.f32 %v1072_v43, %v1060_v41  ;;  %v2334_v41 = vld [vmem:[#allocation8 + $0x30] sm:$0xf]  ;;  %v2589_v43 = vld [vmem:[#allocation8 + $0x34] sm:$0xf0] }
 0x118   :  { %1686 = vmatpush.bf16.msrb.mxu0 %v2600_v33 }
 0x119   :  { %v1086_v35 = vadd.f32 %v1085_v45, %v1073_v5  ;;  %v2335_v45 = vor.u32 %v2589_v43, %v2334_v41  ;;  %v2336_v5 = vld [vmem:[#allocation8 + $0x38] sm:$0xf0]  ;;  %1699 = vmatpush.bf16.msrb.mxu1 %v2608_v34  ;;  %v1502_v41 = vperm.slane %v1499_v37, 1 }
 0x11a   :  { %v2339_v42 = vor.u32 %v2588_v44, %v2336_v5 }
 0x11b   :  { %1477 = vmatpush.bf16.msrb.mxu2 %v2335_v45 }
 0x11c   :  { %1490 = vmatpush.bf16.msrb.mxu3 %v2339_v42  ;;  %1687 = vmatpush.bf16.msrb.mxu0 %v2599_v38  ;;  %v2598_v42 = vld [vmem:[#allocation10] sm:$0xff] }
 0x11d   :  { %1700 = vmatpush.bf16.msrb.mxu1 %v2607_v39 }
 0x11e   :  { %v1098_v40 = vpop.f32.mrf.mxu2  ;;  %v1074_v36 = vpop.f32.mrf.mxu0 }
 0x11f   :  { %v1099_v6 = vadd.f32 %v1098_v40, %v1086_v35  ;;  %v1111_v31 = vpop.f32.mrf.mxu3  ;;  %v1087_v7 = vpop.f32.mrf.mxu1  ;;  %v2326_v35 = vld [vmem:[#allocation8 + $0x20] sm:$0xf]  ;;  %v2587_v40 = vld [vmem:[#allocation8 + $0x24] sm:$0xf0]  ;;  %v2328_v36 = vld [vmem:[#allocation8 + $0x28] sm:$0xf0] }
 0x120   :  { %v2318_v7 = vld [vmem:[#allocation8 + $0x10] sm:$0xf]  ;;  %1688 = vmatpush.bf16.msrb.mxu0 %v2598_v42 }
 0x121   :  { %v1112_v47 = vadd.f32 %v1111_v31, %v1099_v6  ;;  %v2586_v6 = vld [vmem:[#allocation8 + $0x24] sm:$0xf]  ;;  %v2327_v31 = vor.u32 %v2587_v40, %v2326_v35 }
 0x122   :  { %v2331_v46 = vor.u32 %v2586_v6, %v2328_v36  ;;  %v2606_v35 = vld [vmem:[#allocation10 + $0x40] sm:$0xff] }
 0x123   :  { %v2240_v48 = vmul.f32 -1.442695, %v1112_v47  ;;  %1478 = vmatpush.bf16.msrb.mxu2 %v2327_v31  ;;  %1701 = vmatpush.bf16.msrb.mxu1 %v2606_v35 }
 0x124   :  { %1491 = vmatpush.bf16.msrb.mxu3 %v2331_v46 }
 0x125   :  { %2630 = vpow2.f32 %v2240_v48  ;;  %v2584_v48 = vld [vmem:[#allocation8 + $0x14] sm:$0xf] }
 0x126   :  { %v1100_v49 = vpop.f32.mrf.mxu2 }
 0x127   :  { %v1113_v50 = vpop.f32.mrf.mxu3  ;;  %v2624_v49 = vld [vmem:[%s2948_s5] ss:$0 sm:$0xff] }
 0x12b   :  { %v2631_v51 = vpop.eup %2630 }
 0x12c   :  { %v1122_v52 = vadd.f32 1.0, %v2631_v51  ;;  %v2320_v51 = vld [vmem:[#allocation8 + $0x18] sm:$0xf0] }
 0x12e   :  { %2632 = vrcp.f32 %v1122_v52  ;;  %v1149_v56 = vand.u32 2147483648, %v1122_v52  ;;  %v1147_v59 = vand.u32 2147483647, %v1122_v52  ;;  %vm1143_vm5 = vweird.f32 %v1122_v52 }
 0x130   :  { %v1150_v61 = vor.u32 1.1754944e-38, %v1149_v56  ;;  %vm1148_vm7 = vcmp.eq.f32.partialorder %v1147_v59, 8.507059e+37  ;;  %v2312_v59 = vld [vmem:[#allocation8 + $0x8] sm:$0xf0] }
 0x134   :  { %v2633_v53 = vpop.eup %2632 }
 0x135   :  { %v1139_v54 = vmul.f32 %v2633_v53, %v1122_v52  ;;  %vm1144_vm4 = vweird.f32 %v2633_v53  ;;  %v2323_v52 = vor.u32 %v2584_v48, %v2320_v51 }
 0x136   :  { %vm1145_vm6 = vmor %vm1143_vm5, %vm1144_vm4 }
 0x137   :  { %v1140_v55 = vsub.f32 1.0, %v1139_v54  ;;  %v2583_v54 = vld [vmem:[#allocation8 + $0x4] sm:$0xf0]  ;;  %1492 = vmatpush.bf16.msrb.mxu3 %v2323_v52 }
 0x139   :  { %v1141_v58 = vmul.f32 %v2633_v53, %v1140_v55  ;;  %v2582_v55 = vld [vmem:[#allocation8 + $0x4] sm:$0xf] }
 0x13b   :  { %v1142_v60 = vadd.f32 %v2633_v53, %v1141_v58 }
 0x13d   :  { %v1146_v62 = vsel %vm1145_vm6, %v2633_v53, %v1142_v60  ;;  %v2310_v53 = vld [vmem:[#allocation8] sm:$0xf] }
 0x13e   :  { %v1151_v63 = vsel %vm1148_vm7, %v1150_v61, %v1146_v62  ;;  %v2311_v58 = vor.u32 %v2583_v54, %v2310_v53  ;;  %v2315_v61 = vor.u32 %v2582_v55, %v2312_v59 }
 0x13f   :  { %v1154_v0 = vmul.f32 %v1151_v63, %v1112_v47  ;;  %v2585_v47 = vld [vmem:[#allocation8 + $0x14] sm:$0xf0] }
 0x140   :  { %v2319_v50 = vor.u32 %v2585_v47, %v2318_v7  ;;  %1493 = vmatpush.bf16.msrb.mxu3 %v2315_v61 }
 0x141   :  { %v1156_v1 = vpack.c.bf16 %v1154_v0, %v1154_v0 }
 0x142   :  { %1479 = vmatpush.bf16.msrb.mxu2 %v2319_v50 }
 0x143   :  { %1310 = vmatmul.bf16.vlgmr.msra.gmra.mxu1 %v1156_v1 }
 0x146   :  { %1480 = vmatpush.bf16.msrb.mxu2 %v2311_v58 }
 0x180   :  { %v2922_v2 = vpop.f32.mrf.mxu0 }
 0x181   :  { %v1299_v56 = vadd.f32 %v2624_v49, %v2922_v2 }
 0x185   :  { %v1376_v18 = vpop.f32.mrf.mxu2  ;;  %v1389_v19 = vpop.f32.mrf.mxu3 }
 0x188   :  { %v1300_v3 = vpop.f32.mrf.mxu0 }
 0x18d   :  { %v1378_v20 = vpop.f32.mrf.mxu2  ;;  %v1391_v21 = vpop.f32.mrf.mxu3 }
 0x1c0   :  { %v1311_v60 = vpop.f32.mrf.mxu1 }
 0x1c1   :  { %v1312_v62 = vadd.f32 %v1311_v60, %v1299_v56 }
 0x1c3   :  { %v2305_v63 = vmul.f32 -1.442695, %v1312_v62 }
 0x1c5   :  { %2634 = vpow2.f32 %v2305_v63 }
 0x1c8   :  { %v1313_v0 = vpop.f32.mrf.mxu1 }
 0x1cb   :  { %v2635_v1 = vpop.eup %2634 }
 0x1cc   :  { %v1318_v3 = vadd.f32 1.0, %v2635_v1 }
 0x1ce   :  { %2636 = vrcp.f32 %v1318_v3  ;;  %v1330_v10 = vand.u32 2147483648, %v1318_v3  ;;  %v1328_v2 = vand.u32 2147483647, %v1318_v3  ;;  %vm1324_vm11 = vweird.f32 %v1318_v3 }
 0x1d0   :  { %v1331_v13 = vor.u32 1.1754944e-38, %v1330_v10  ;;  %vm1329_vm13 = vcmp.eq.f32.partialorder %v1328_v2, 8.507059e+37 }
 0x1d4   :  { %v2637_v4 = vpop.eup %2636 }
 0x1d5   :  { %v1320_v8 = vmul.f32 %v2637_v4, %v1318_v3  ;;  %vm1325_vm10 = vweird.f32 %v2637_v4 }
 0x1d6   :  { %vm1326_vm12 = vmor %vm1324_vm11, %vm1325_vm10 }
 0x1d7   :  { %v1321_v9 = vsub.f32 1.0, %v1320_v8 }
 0x1d9   :  { %v1322_v11 = vmul.f32 %v2637_v4, %v1321_v9 }
 0x1db   :  { %v1323_v12 = vadd.f32 %v2637_v4, %v1322_v11 }
 0x1dd   :  { %v1327_v14 = vsel %vm1326_vm12, %v2637_v4, %v1323_v12 }
 0x1de   :  { %v1332_v15 = vsel %vm1329_vm13, %v1331_v13, %v1327_v14 }
 0x1df   :  { %v1334_v16 = vmul.f32 %v1332_v15, %v1312_v62  ;;  %v2625_v15 = vld [vmem:[%s2953_s10] ss:$0 sm:$0xff] }
 0x1e1   :  { %v1335_v17 = vpack.c.bf16 %v1334_v16, %v1334_v16 }
 0x1e3   :  { %1481 = vmatmul.bf16.vlgmr.msrb.gmra.mxu2 %v1335_v17  ;;  %1494 = vmatmul.bf16.vlgmr.msrb.gmra.mxu3 %v1335_v17 }
 0x266   :  { %v1482_v43 = vpop.f32.mrf.mxu2  ;;  %v1495_v44 = vpop.f32.mrf.mxu3 }
 0x267   :  { %v1483_v45 = vadd.f32 %v1482_v43, %v1376_v18  ;;  %v1496_v5 = vadd.f32 %v1495_v44, %v1389_v19 }
 0x269   :  { %v1505_v40 = vadd.f32 %v1501_v57, %v1483_v45  ;;  %v1506_v6 = vadd.f32 %v1502_v41, %v1496_v5 }
 0x26b   :  { %v2372_v31 = vmul.f32 -1.442695, %v1505_v40  ;;  %v2373_v36 = vmul.f32 -1.442695, %v1506_v6 }
 0x26d   :  { %2638 = vpow2.f32 %v2372_v31 }
 0x26e   :  { %2640 = vpow2.f32 %v2373_v36  ;;  %v1484_v46 = vpop.f32.mrf.mxu2  ;;  %v1497_v7 = vpop.f32.mrf.mxu3 }
 0x273   :  { %v2639_v47 = vpop.eup %2638 }
 0x274   :  { %v2641_v48 = vpop.eup %2640  ;;  %v1513_v49 = vadd.f32 1.0, %v2639_v47 }
 0x275   :  { %v1514_v50 = vadd.f32 1.0, %v2641_v48 }
 0x276   :  { %2642 = vrcp.f32 %v1513_v49  ;;  %v1526_v56 = vand.u32 2147483648, %v1513_v49  ;;  %v1524_v60 = vand.u32 2147483647, %v1513_v49  ;;  %vm1520_vm0 = vweird.f32 %v1513_v49 }
 0x277   :  { %2644 = vrcp.f32 %v1514_v50  ;;  %v1541_v61 = vand.u32 2147483648, %v1514_v50  ;;  %v1539_v63 = vand.u32 2147483647, %v1514_v50  ;;  %vm1535_vm2 = vweird.f32 %v1514_v50 }
 0x278   :  { %v1527_v1 = vor.u32 1.1754944e-38, %v1526_v56  ;;  %vm1525_vm3 = vcmp.eq.f32.partialorder %v1524_v60, 8.507059e+37 }
 0x279   :  { %v1542_v8 = vor.u32 1.1754944e-38, %v1541_v61  ;;  %vm1540_vm5 = vcmp.eq.f32.partialorder %v1539_v63, 8.507059e+37 }
 0x27c   :  { %v2643_v51 = vpop.eup %2642 }
 0x27d   :  { %v2645_v52 = vpop.eup %2644  ;;  %v1516_v53 = vmul.f32 %v2643_v51, %v1513_v49  ;;  %vm1521_vm14 = vweird.f32 %v2643_v51 }
 0x27e   :  { %v1531_v54 = vmul.f32 %v2645_v52, %v1514_v50  ;;  %vm1536_vm15 = vweird.f32 %v2645_v52  ;;  %vm1522_vm1 = vmor %vm1520_vm0, %vm1521_vm14 }
 0x27f   :  { %v1517_v55 = vsub.f32 1.0, %v1516_v53  ;;  %vm1537_vm4 = vmor %vm1535_vm2, %vm1536_vm15 }
 0x280   :  { %v1532_v58 = vsub.f32 1.0, %v1531_v54 }
 0x281   :  { %v1518_v59 = vmul.f32 %v2643_v51, %v1517_v55 }
 0x282   :  { %v1533_v62 = vmul.f32 %v2645_v52, %v1532_v58 }
 0x283   :  { %v1519_v0 = vadd.f32 %v2643_v51, %v1518_v59 }
 0x284   :  { %v1534_v3 = vadd.f32 %v2645_v52, %v1533_v62 }
 0x285   :  { %v1523_v4 = vsel %vm1522_vm1, %v2643_v51, %v1519_v0 }
 0x286   :  { %v1528_v9 = vsel %vm1525_vm3, %v1527_v1, %v1523_v4  ;;  %v1538_v10 = vsel %vm1537_vm4, %v2645_v52, %v1534_v3 }
 0x287   :  { %v1545_v11 = vmul.f32 %v1528_v9, %v1505_v40  ;;  %v1543_v2 = vsel %vm1540_vm5, %v1542_v8, %v1538_v10 }
 0x288   :  { %v1546_v12 = vmul.f32 %v1543_v2, %v1506_v6 }
 0x289   :  { %v1547_v13 = vpack.c.bf16 %v1545_v11, %v1545_v11 }
 0x28a   :  { %v1548_v14 = vpack.c.bf16 %v1546_v12, %v1546_v12 }
 0x28b   :  { %1689 = vmatmul.bf16.vlgmr.msrb.gmra.mxu0 %v1547_v13 }
 0x28c   :  { %1702 = vmatmul.bf16.vlgmr.msrb.gmra.mxu1 %v1548_v14 }
 0x308   :  { %v1690_v16 = vpop.f32.mrf.mxu0 }
 0x309   :  { %v1691_v17 = vadd.f32 %v2625_v15, %v1690_v16  ;;  %v1703_v18 = vpop.f32.mrf.mxu1 }
 0x30b   :  { %v1704_v19 = vadd.f32 %v1703_v18, %v1691_v17 }
 0x30d   :  { %1707 = vst [vmem:[#allocation11] sm:$0xff] %v1704_v19 }
 0x30e   :  { %1718 = dma.vmem_to_hbm [thread:$0]  %s1714_s30, 128, %s1716_s13, [#allocation4]  }
 0x310   :  { %v1692_v20 = vpop.f32.mrf.mxu0 }
 0x311   :  { %v1705_v21 = vpop.f32.mrf.mxu1 }
 0x312   :  { %2796 = dma.done.wait [#allocation4], 128  }
 0x313   :  { %2797 = vsyncadd [#allocation4], 4294967168 }
 0x314   :  { %1723 = vsyncpa [#allocation3], 1 }
 0x315   :  { %1724 = vsyncpa [#allocation6], 1 }
 0x316   :  { %1725 = vsyncpa [#allocation9], 1 }
 0x317   :  { %1726 = vsyncpa [#allocation4], 1 }

</bundles_post_ra>
